<compile_context>
chip_gen: v7x
topology: tpu7x:2x2x1
jax: 0.10.0
libtpu: 0.0.40
codegen_flags: <defaults>
</compile_context>

<pallas_src>
import functools
import math

import jax
import jax.numpy as jnp
from jax.experimental import pallas as pl
from jax.experimental.pallas import tpu as pltpu


def _round_up(x, m):
    return (x + m - 1) // m * m


# ----------------------------------------------------------------------------
# Chip detection (tile sizing / dimension semantics / epilogue dtype).
# ----------------------------------------------------------------------------
def _device_kind():
    try:
        return jax.devices()[0].device_kind.lower()
    except Exception:  # pragma: no cover - CPU fallback
        return ""


def _num_tensorcores(kind=None):
    kind = _device_kind() if kind is None else kind
    # v7x exposes 2 TensorCores per chip; v5e/v6e expose 1.
    return 2 if "v7" in kind else 1


def _has_bf16_valu(kind=None):
    kind = _device_kind() if kind is None else kind
    # v6e / v7x have a native bf16 VPU; v5e does not (bf16 elementwise widens).
    return ("v6" in kind) or ("v7" in kind)


def _default_tile_n(n, num_tc=1):
    if num_tc >= 2:
        # >=2 grid steps so every TensorCore gets work; cap per-step rows so
        # the [tile_n, P] activation temps stay inside v7x's 64 MiB VMEM.
        return max(8, min(4096, _round_up(-(-n // num_tc), 8)))
    if n <= 4096:
        return n  # single tile: no per-step pipeline overhead
    n_tiles = -(-n // 8192)
    return _round_up(-(-n // n_tiles), 8)


# ----------------------------------------------------------------------------
# Pallas kernel: all heads fused -- hidden MLP chain + packed final projection.
# ----------------------------------------------------------------------------
def _fused_heads_kernel(num_hidden, *refs):
    # refs = (x_ref, [w_ref, shift_ref] * num_hidden, wf_ref, bf_ref, out_ref)
    x_ref = refs[0]
    out_ref = refs[-1]
    params = refs[1:-1]

    h = x_ref[...]            # already in matmul dtype (bf16), cast in wrapper
    mm_dtype = h.dtype
    idx = 0
    for _ in range(num_hidden):
        w = params[idx][...]          # (C, P) or (P, P); BN scale pre-folded
        shift = params[idx + 1][...]  # (1, P); bf16 on v6e/v7x, f32 on v5e
        idx += 2
        acc = jnp.dot(h, w, preferred_element_type=jnp.float32)   # MXU, f32 acc
        # Epilogue (BN shift + ReLU) in the shift's dtype, then back to matmul
        # dtype for the next MXU contraction.
        h = jnp.maximum(acc.astype(shift.dtype) + shift, 0.0).astype(mm_dtype)
    wf = params[idx][...]        # (P, OUT_P)
    bf = params[idx + 1][...]    # (1, OUT_P) f32 bias
    y = jnp.dot(h, wf, preferred_element_type=jnp.float32) + bf
    out_ref[...] = y.astype(out_ref.dtype)


# ----------------------------------------------------------------------------
# Parameter fusion: fold BN scale into weights, pack all heads into one set of
# lane-dense matrices.
# ----------------------------------------------------------------------------
def fuse_params(params, head_order, input_channels,
                matmul_dtype=jnp.bfloat16, epilogue_dtype=None):
    if epilogue_dtype is None:
        epilogue_dtype = jnp.bfloat16 if _has_bf16_valu() else jnp.float32

    C = input_channels
    H = len(head_order)
    num_hidden_per = [len(params[n]['hidden']) for n in head_order]
    # TODO(synk): heads with num_conv == 1 (no hidden layers) are not supported
    # by the fused block-diagonal formulation.
    assert min(num_hidden_per) >= 1, "fused kernel requires num_conv >= 2"
    n_layers = max(num_hidden_per)

    P = _round_up(max(H * C, 128), 128)          # lane-dense packed hidden width

    out_chs = [params[n]['final_w'].shape[1] for n in head_order]
    offs = [0]
    for oc in out_chs:
        offs.append(offs[-1] + oc)
    OUT_P = _round_up(max(offs[-1], 128), 128)   # lane-dense fused output width

    layers = []
    # Layer 0: x:[N,C] -> packed h:[N,P]; per-head (W0 * scale0) concatenated
    # along the output axis (scale broadcasts over columns of the [in,out] W).
    w0 = jnp.zeros((C, P), jnp.float32)
    s0 = jnp.zeros((1, P), jnp.float32)
    for j, name in enumerate(head_order):
        w, scale, shift = params[name]['hidden'][0]
        w0 = w0.at[:, j * C:(j + 1) * C].set(w * scale)
        s0 = s0.at[:, j * C:(j + 1) * C].set(shift)
    layers.append((w0.astype(matmul_dtype), s0.astype(epilogue_dtype)))

    # Layers 1..: block-diagonal; shallower heads get identity pass-through
    # blocks with shift 0 (exact: their activations are post-ReLU, >= 0).
    for l in range(1, n_layers):
        wl = jnp.zeros((P, P), jnp.float32)
        sl = jnp.zeros((1, P), jnp.float32)
        for j, name in enumerate(head_order):
            blk = slice(j * C, (j + 1) * C)
            hidden = params[name]['hidden']
            if l < len(hidden):
                w, scale, shift = hidden[l]
                wl = wl.at[blk, blk].set(w * scale)
                sl = sl.at[:, blk].set(shift)
            else:
                wl = wl.at[blk, blk].set(jnp.eye(C, dtype=jnp.float32))
        layers.append((wl.astype(matmul_dtype), sl.astype(epilogue_dtype)))

    # Final projection: packed h:[N,P] -> packed out:[N,OUT_P].
    wf = jnp.zeros((P, OUT_P), jnp.float32)
    bf = jnp.zeros((1, OUT_P), jnp.float32)
    for j, name in enumerate(head_order):
        wf = wf.at[j * C:(j + 1) * C, offs[j]:offs[j + 1]].set(params[name]['final_w'])
        bf = bf.at[:, offs[j]:offs[j + 1]].set(params[name]['final_b'])

    return {
        'layers': layers,
        'final_w': wf.astype(matmul_dtype),
        'final_b': bf,                                        # bias stays f32
        'out_slices': {n: (offs[j], offs[j + 1]) for j, n in enumerate(head_order)},
        'packed_width': P,
        'out_width': OUT_P,
        'matmul_dtype': matmul_dtype,
        'epilogue_dtype': epilogue_dtype,
    }


# ----------------------------------------------------------------------------
# pallas_call wrapper: one fused launch for all heads, rows tiled in parallel.
# ----------------------------------------------------------------------------
def run_fused(x, fused, *, tile_n=None, out_dtype=None):
    N, C = x.shape
    out_p = fused['out_width']
    layers = fused['layers']
    num_hidden = len(layers)
    mm_dtype = fused['matmul_dtype']
    if out_dtype is None:
        # bf16 output slab by default: the padded f32 writeback was the
        # dominant HBM traffic at these shapes.
        out_dtype = mm_dtype

    kind = _device_kind()
    num_tc = _num_tensorcores(kind)
    if tile_n is None:
        tile_n = _default_tile_n(N, num_tc)
    tile_n = min(tile_n, N)

    # Cast x once in the wrapper: halves input DMA bytes and removes a
    # per-tile f32->bf16 pack inside the kernel.
    x_mm = x.astype(mm_dtype)

    flat_params = []
    in_specs = [pl.BlockSpec((tile_n, C), lambda i: (i, 0))]  # x: row-tiled
    for (w, s) in layers:
        flat_params += [w, s]
        in_specs += [pl.BlockSpec(w.shape, lambda i: (0, 0)),
                     pl.BlockSpec(s.shape, lambda i: (0, 0))]
    flat_params += [fused['final_w'], fused['final_b']]
    in_specs += [pl.BlockSpec(fused['final_w'].shape, lambda i: (0, 0)),
                 pl.BlockSpec(fused['final_b'].shape, lambda i: (0, 0))]

    grid = (pl.cdiv(N, tile_n),)

    # Only CORE_PARALLEL changes codegen for multi-TensorCore sharding (v7x);
    # plain "parallel" elsewhere (measured ~= "arbitrary" on 1-TC chips).
    if num_tc >= 2:
        dim_sem = (getattr(pltpu, "CORE_PARALLEL", "parallel"),)
    else:
        dim_sem = ("parallel",)

    p = fused['packed_width']
    flops = 2 * N * (C * p + (num_hidden - 1) * p * p + p * out_p)
    bytes_accessed = (int(x_mm.size) * x_mm.dtype.itemsize
                      + N * out_p * jnp.dtype(out_dtype).itemsize)
    for a in flat_params:
        bytes_accessed += int(a.size) * a.dtype.itemsize

    return pl.pallas_call(
        functools.partial(_fused_heads_kernel, num_hidden),
        out_shape=jax.ShapeDtypeStruct((N, out_p), out_dtype),
        grid_spec=pltpu.PrefetchScalarGridSpec(
            num_scalar_prefetch=0,
            grid=grid,
            in_specs=in_specs,
            out_specs=pl.BlockSpec((tile_n, out_p), lambda i: (i, 0)),
        ),
        compiler_params=pltpu.CompilerParams(
            dimension_semantics=dim_sem),
        cost_estimate=pl.CostEstimate(
            flops=int(flops), transcendentals=0,
            bytes_accessed=int(bytes_accessed)),
    )(x_mm, *flat_params)


def sparse_separate_head_forward(x, fused, *, tile_n=None, out_dtype=None,
                                 return_packed=False):
    """Fused forward: one kernel launch for all heads.

    With return_packed=True the raw [N, OUT_P] slab and `out_slices` are
    returned so downstream consumers can read per-head columns without
    materializing sliced copies.
    """
    packed = run_fused(x, fused, tile_n=tile_n, out_dtype=out_dtype)
    if return_packed:
        return packed, fused['out_slices']
    return {name: packed[:, a:b] for name, (a, b) in fused['out_slices'].items()}


# ----------------------------------------------------------------------------
# Parameter construction (deterministic, mirrors the PyTorch __init__ shapes).
# ----------------------------------------------------------------------------
def build_params(key, input_channels, sep_head_dict, init_bias=-2.19):
    eps = 1e-5
    params = {}
    for cur_name, cfg in sep_head_dict.items():
        out_channels = cfg['out_channels']
        num_conv = cfg['num_conv']
        hidden = []
        for _ in range(num_conv - 1):
            key, k1, k2, k3 = jax.random.split(key, 4)
            # Linear(C, C, bias=False); kaiming-style init. Stored as [in, out].
            std = math.sqrt(2.0 / input_channels)
            w = jax.random.normal(k1, (input_channels, input_channels),
                                  jnp.float32) * std
            # BatchNorm1d params (perturbed from defaults so the scale/shift
            # path is exercised), folded to eval-mode scale/shift.
            gamma = 1.0 + 0.1 * jax.random.normal(k2, (1, input_channels), jnp.float32)
            beta = 0.1 * jax.random.normal(k3, (1, input_channels), jnp.float32)
            running_mean = jnp.zeros((1, input_channels), jnp.float32)
            running_var = jnp.ones((1, input_channels), jnp.float32)
            scale = gamma / jnp.sqrt(running_var + eps)
            shift = beta - running_mean * scale
            hidden.append((w, scale, shift))
        key, kf = jax.random.split(key)
        std = math.sqrt(2.0 / input_channels)
        wf = jax.random.normal(kf, (input_channels, out_channels),
                               jnp.float32) * std             # [in, out]
        if 'hm' in cur_name:
            bf = jnp.full((1, out_channels), init_bias, jnp.float32)
        else:
            bf = jnp.zeros((1, out_channels), jnp.float32)
        params[cur_name] = {'hidden': hidden, 'final_w': wf, 'final_b': bf}
    return params


# ----------------------------------------------------------------------------
# References.
# ----------------------------------------------------------------------------
def reference_forward(x, params):
    """Pure-f32 per-head reference mirroring the PyTorch module."""
    ret = {}
    for name, p in params.items():
        h = x.astype(jnp.float32)
        for (w, scale, shift) in p['hidden']:
            h = jnp.maximum((h @ w) * scale + shift, 0.0)
        ret[name] = h @ p['final_w'] + p['final_b']
    return ret


def fused_reference_forward(x, fused, out_dtype=None):
    """Plain-JAX replica of the fused kernel math (same dtypes / folding)."""
    mm = fused['matmul_dtype']
    if out_dtype is None:
        out_dtype = mm
    h = x.astype(mm)
    for (w, s) in fused['layers']:
        acc = jnp.dot(h, w, preferred_element_type=jnp.float32)
        h = jnp.maximum(acc.astype(s.dtype) + s, 0.0).astype(mm)
    wf, bf = fused['final_w'], fused['final_b']
    y = jnp.dot(h, wf, preferred_element_type=jnp.float32) + bf
    return {name: y[:, a:b].astype(out_dtype)
            for name, (a, b) in fused['out_slices'].items()}


if __name__ == "__main__":
    key = jax.random.PRNGKey(0)

    input_channels = 32
    N = 1024  # number of sparse voxel features (rows)
    sep_head_dict = {
        'hm':     {'out_channels': 3, 'num_conv': 2},
        'center': {'out_channels': 2, 'num_conv': 2},
        'dim':    {'out_channels': 3, 'num_conv': 3},
    }

    key, kx, kp = jax.random.split(key, 3)
    x = jax.random.normal(kx, (N, input_channels), jnp.float32)
    params = build_params(kp, input_channels, sep_head_dict)

    head_order = list(sep_head_dict)
    fused = fuse_params(params, head_order, input_channels,
                        matmul_dtype=jnp.bfloat16)

    # tile_n=None: single tile on 1-TC chips (N <= 4096), split across cores
    # on multi-TC chips. Output slab in bf16 (default).
    out = sparse_separate_head_forward(x, fused)
    out = jax.tree_util.tree_map(jax.block_until_ready, out)

    ref_fused = fused_reference_forward(x, fused)  # same bf16 math / dtypes
    ref_f32 = reference_forward(x, params)         # pure-f32 module semantics
    for name in sep_head_dict:
        assert out[name].shape == (N, sep_head_dict[name]['out_channels'])
        # Kernel vs. matched plain-JAX fused math: tight (same dtype chain,
        # slack only for f32 accumulation order / bf16 rounding ties).
        assert jnp.allclose(out[name].astype(jnp.float32),
                            ref_fused[name].astype(jnp.float32),
                            atol=3e-2, rtol=2e-2), name
        # Kernel vs. pure-f32 module math: looser tolerance covers the bf16
        # matmul-input/epilogue/output rounding (accumulation stays f32).
        assert jnp.allclose(out[name].astype(jnp.float32), ref_f32[name],
                            atol=2e-1, rtol=1e-1), name

    print("KERNEL_OK")
</pallas_src>

<mosaic_0001>
module attributes {stable_mosaic.version = 11 : i64} {
  func.func @_fused_heads_kernel(%arg0: i32, %arg1: memref<1024x32xbf16, #tpu.memory_space<vmem>>, %arg2: memref<32x128xbf16, #tpu.memory_space<vmem>>, %arg3: memref<1x128xf32, #tpu.memory_space<vmem>>, %arg4: memref<128x128xbf16, #tpu.memory_space<vmem>>, %arg5: memref<1x128xf32, #tpu.memory_space<vmem>>, %arg6: memref<128x128xbf16, #tpu.memory_space<vmem>>, %arg7: memref<1x128xf32, #tpu.memory_space<vmem>>, %arg8: memref<1024x128xbf16, #tpu.memory_space<vmem>>) attributes {dimension_semantics = [#tpu.dimension_semantics<parallel>], iteration_bounds = array<i64: 1>, scalar_prefetch = 0 : i64, scratch_operands = 0 : i64, tpu.core_type = #tpu.core_type<tc>, window_params = [{transform_indices = @transform_0, window_bounds = array<i64: 1024, 32>}, {pipeline_mode = #tpu.pipeline_mode<synchronous>, transform_indices = @transform_1, window_bounds = array<i64: 32, 128>}, {pipeline_mode = #tpu.pipeline_mode<synchronous>, transform_indices = @transform_2, window_bounds = array<i64: 1, 128>}, {pipeline_mode = #tpu.pipeline_mode<synchronous>, transform_indices = @transform_3, window_bounds = array<i64: 128, 128>}, {pipeline_mode = #tpu.pipeline_mode<synchronous>, transform_indices = @transform_4, window_bounds = array<i64: 1, 128>}, {pipeline_mode = #tpu.pipeline_mode<synchronous>, transform_indices = @transform_5, window_bounds = array<i64: 128, 128>}, {pipeline_mode = #tpu.pipeline_mode<synchronous>, transform_indices = @transform_6, window_bounds = array<i64: 1, 128>}, {transform_indices = @transform_7, window_bounds = array<i64: 1024, 128>}]} {
    %c0 = arith.constant 0 : index
    %c0_0 = arith.constant 0 : index
    %0 = vector.load %arg1[%c0, %c0_0] : memref<1024x32xbf16, #tpu.memory_space<vmem>>, vector<1024x32xbf16>
    %c0_1 = arith.constant 0 : index
    %c0_2 = arith.constant 0 : index
    %1 = vector.load %arg2[%c0_1, %c0_2] : memref<32x128xbf16, #tpu.memory_space<vmem>>, vector<32x128xbf16>
    %c0_3 = arith.constant 0 : index
    %c0_4 = arith.constant 0 : index
    %2 = vector.load %arg3[%c0_3, %c0_4] : memref<1x128xf32, #tpu.memory_space<vmem>>, vector<1x128xf32>
    %cst = arith.constant dense<0.000000e+00> : vector<1024x128xf32>
    %3 = tpu.matmul %0, %1, %cst {dimension_numbers = #tpu.dot_dimension_numbers<[1], [0], [0], [1], [0, 0, 1, 1], [], []>} : vector<1024x32xbf16>, vector<32x128xbf16>, vector<1024x128xf32> -> vector<1024x128xf32>
    %4 = vector.broadcast %2 : vector<1x128xf32> to vector<1024x128xf32>
    %5 = arith.addf %3, %4 : vector<1024x128xf32>
    %cst_5 = arith.constant 0.000000e+00 : f32
    %6 = vector.broadcast %cst_5 : f32 to vector<1024x128xf32>
    %7 = arith.maximumf %5, %6 : vector<1024x128xf32>
    %8 = arith.truncf %7 : vector<1024x128xf32> to vector<1024x128xbf16>
    %c0_6 = arith.constant 0 : index
    %c0_7 = arith.constant 0 : index
    %9 = vector.load %arg4[%c0_6, %c0_7] : memref<128x128xbf16, #tpu.memory_space<vmem>>, vector<128x128xbf16>
    %c0_8 = arith.constant 0 : index
    %c0_9 = arith.constant 0 : index
    %10 = vector.load %arg5[%c0_8, %c0_9] : memref<1x128xf32, #tpu.memory_space<vmem>>, vector<1x128xf32>
    %cst_10 = arith.constant dense<0.000000e+00> : vector<1024x128xf32>
    %11 = tpu.matmul %8, %9, %cst_10 {dimension_numbers = #tpu.dot_dimension_numbers<[1], [0], [0], [1], [0, 0, 1, 1], [], []>} : vector<1024x128xbf16>, vector<128x128xbf16>, vector<1024x128xf32> -> vector<1024x128xf32>
    %12 = vector.broadcast %10 : vector<1x128xf32> to vector<1024x128xf32>
    %13 = arith.addf %11, %12 : vector<1024x128xf32>
    %cst_11 = arith.constant 0.000000e+00 : f32
    %14 = vector.broadcast %cst_11 : f32 to vector<1024x128xf32>
    %15 = arith.maximumf %13, %14 : vector<1024x128xf32>
    %16 = arith.truncf %15 : vector<1024x128xf32> to vector<1024x128xbf16>
    %c0_12 = arith.constant 0 : index
    %c0_13 = arith.constant 0 : index
    %17 = vector.load %arg6[%c0_12, %c0_13] : memref<128x128xbf16, #tpu.memory_space<vmem>>, vector<128x128xbf16>
    %c0_14 = arith.constant 0 : index
    %c0_15 = arith.constant 0 : index
    %18 = vector.load %arg7[%c0_14, %c0_15] : memref<1x128xf32, #tpu.memory_space<vmem>>, vector<1x128xf32>
    %cst_16 = arith.constant dense<0.000000e+00> : vector<1024x128xf32>
    %19 = tpu.matmul %16, %17, %cst_16 {dimension_numbers = #tpu.dot_dimension_numbers<[1], [0], [0], [1], [0, 0, 1, 1], [], []>} : vector<1024x128xbf16>, vector<128x128xbf16>, vector<1024x128xf32> -> vector<1024x128xf32>
    %20 = vector.broadcast %18 : vector<1x128xf32> to vector<1024x128xf32>
    %21 = arith.addf %19, %20 : vector<1024x128xf32>
    %22 = arith.truncf %21 : vector<1024x128xf32> to vector<1024x128xbf16>
    %c0_17 = arith.constant 0 : index
    %c0_18 = arith.constant 0 : index
    %23 = vector.load %arg8[%c0_17, %c0_18] : memref<1024x128xbf16, #tpu.memory_space<vmem>>, vector<1024x128xbf16>
    tpu.vector_store %arg8[%c0_17, %c0_18], %22 {strides = array<i32>} : memref<1024x128xbf16, #tpu.memory_space<vmem>>, vector<1024x128xbf16>,
    return
  }
  func.func @transform_0(%arg0: i32) -> (i32, i32) {
    %c0_i32 = arith.constant 0 : i32
    %c0_i32_0 = arith.constant 0 : i32
    return %arg0, %c0_i32 : i32, i32
  }
  func.func @transform_1(%arg0: i32) -> (i32, i32) {
    %c0_i32 = arith.constant 0 : i32
    %c0_i32_0 = arith.constant 0 : i32
    %c0_i32_1 = arith.constant 0 : i32
    return %c0_i32, %c0_i32_0 : i32, i32
  }
  func.func @transform_2(%arg0: i32) -> (i32, i32) {
    %c0_i32 = arith.constant 0 : i32
    %c0_i32_0 = arith.constant 0 : i32
    %c0_i32_1 = arith.constant 0 : i32
    return %c0_i32, %c0_i32_0 : i32, i32
  }
  func.func @transform_3(%arg0: i32) -> (i32, i32) {
    %c0_i32 = arith.constant 0 : i32
    %c0_i32_0 = arith.constant 0 : i32
    %c0_i32_1 = arith.constant 0 : i32
    return %c0_i32, %c0_i32_0 : i32, i32
  }
  func.func @transform_4(%arg0: i32) -> (i32, i32) {
    %c0_i32 = arith.constant 0 : i32
    %c0_i32_0 = arith.constant 0 : i32
    %c0_i32_1 = arith.constant 0 : i32
    return %c0_i32, %c0_i32_0 : i32, i32
  }
  func.func @transform_5(%arg0: i32) -> (i32, i32) {
    %c0_i32 = arith.constant 0 : i32
    %c0_i32_0 = arith.constant 0 : i32
    %c0_i32_1 = arith.constant 0 : i32
    return %c0_i32, %c0_i32_0 : i32, i32
  }
  func.func @transform_6(%arg0: i32) -> (i32, i32) {
    %c0_i32 = arith.constant 0 : i32
    %c0_i32_0 = arith.constant 0 : i32
    %c0_i32_1 = arith.constant 0 : i32
    return %c0_i32, %c0_i32_0 : i32, i32
  }
  func.func @transform_7(%arg0: i32) -> (i32, i32) {
    %c0_i32 = arith.constant 0 : i32
    %c0_i32_0 = arith.constant 0 : i32
    return %arg0, %c0_i32 : i32, i32
  }
}

</mosaic_0001>

<bundles_post_ra>
// kernel: tpu_custom_call.1
= control target key start
LH: loop header
LB: loop body
LE: loop exit
PB: predicated region body
PF: predicated region fallthrough
CT: control target
= control target key end

     0   :  { %vm499_vm0 = vcmask 261120   ;;  %s5896_s0 = inlined_call_operand.vmem [shape: bf16[1024,32], index: 0, kind: input, shape index: {}]   ;;  %s5897_s1 = inlined_call_operand.vmem [shape: bf16[32,128], index: 1, kind: input, shape index: {}]   ;;  %s5898_s2 = inlined_call_operand.vmem [shape: f32[1,128], index: 2, kind: input, shape index: {}]   ;;  %s5899_s3 = inlined_call_operand.vmem [shape: bf16[128,128], index: 3, kind: input, shape index: {}]   ;;  %s5900_s4 = inlined_call_operand.vmem [shape: f32[1,128], index: 4, kind: input, shape index: {}]   ;;  %s5901_s5 = inlined_call_operand.vmem [shape: bf16[128,128], index: 5, kind: input, shape index: {}]   ;;  %s5902_s6 = inlined_call_operand.vmem [shape: f32[1,128], index: 6, kind: input, shape index: {}]   ;;  %s5903_s7 = inlined_call_operand.hbm [shape: bf16[1024,128], index: 7, kind: output, shape index: {}]  }
   0x1   :  { %v4934_v0 = vld [vmem:[%s5897_s1] sm:$0xff]   ;;  %v4935_v1 = vld [vmem:[%s5897_s1 + $0x8] sm:$0xff]   ;;  %v4938_v4 = vld [vmem:[%s5896_s0 + $0x10] sm:$0xff]  }
   0x2   :  { %4507 = vmatprep.subr.bf16.mxu0 %v4934_v0  ;;  %v4936_v2 = vld [vmem:[%s5896_s0] sm:$0xff]   ;;  %4927 = vmatprep.subr.bf16.mxu1 %v4934_v0  ;;  %v4937_v3 = vld [vmem:[%s5896_s0 + $0x8] sm:$0xff]   ;;  %v4939_v5 = vld [vmem:[%s5896_s0 + $0x18] sm:$0xff]  }
   0x3   :  { %4508 = vmatpush3.bf16.msra.mxu0 %v4934_v0  ;;  %4929 = vmatpush3.bf16.msra.mxu1 %v4934_v0  ;;  %v4940_v6 = vld [vmem:[%s5896_s0 + $0x20] sm:$0xff]   ;;  %v4941_v7 = vld [vmem:[%s5896_s0 + $0x28] sm:$0xff]   ;;  %v4942_v8 = vld [vmem:[%s5896_s0 + $0x30] sm:$0xff]  }
   0x4   :  { %4509 = vmatprep.subr.bf16.mxu0 %v4935_v1  ;;  %4511 = vmatprep.mubr.msk.bf16.mxu0 %vm499_vm0, %v4936_v2  ;;  %v4960_v9 = vld [vmem:[%s5896_s0 + $0x100] sm:$0xff]   ;;  %v4961_v10 = vld [vmem:[%s5896_s0 + $0x108] sm:$0xff]   ;;  %v4943_v12 = vld [vmem:[%s5896_s0 + $0x38] sm:$0xff]  }
   0x5   :  { %4928 = vmatprep.subr.bf16.mxu1 %v4935_v1  ;;  %4575 = vmatprep.mubr.msk.bf16.mxu1 %vm499_vm0, %v4960_v9  ;;  %v4962_v11 = vld [vmem:[%s5899_s3] sm:$0xff]   ;;  %v4965_v14 = vld [vmem:[%s5896_s0 + $0x110] sm:$0xff]   ;;  %v4966_v15 = vld [vmem:[%s5896_s0 + $0x118] sm:$0xff]  }
   0x6   :  { %v4944_v13 = vld [vmem:[%s5896_s0 + $0x40] sm:$0xff]   ;;  %v4971_v17 = vld [vmem:[%s5899_s3 + $0x8] sm:$0xff]   ;;  %v4946_v19 = vld [vmem:[%s5896_s0 + $0x50] sm:$0xff]  }
   0x7   :  { %4510 = vmatpush3.bf16.msra.mxu0 %v4935_v1  ;;  %4930 = vmatpush3.bf16.msra.mxu1 %v4935_v1  ;;  %v4969_v16 = vld [vmem:[%s5896_s0 + $0x120] sm:$0xff]   ;;  %v4945_v18 = vld [vmem:[%s5896_s0 + $0x48] sm:$0xff]   ;;  %v4974_v21 = vld [vmem:[%s5896_s0 + $0x130] sm:$0xff]  }
   0x8   :  { %4639 = vmatprep.subr.bf16.mxu1 %v4962_v11  ;;  %v4970_v20 = vld [vmem:[%s5896_s0 + $0x128] sm:$0xff]   ;;  %v4947_v22 = vld [vmem:[%s5896_s0 + $0x58] sm:$0xff]   ;;  %v4980_v23 = vld [vmem:[%s5899_s3 + $0x10] sm:$0xff]  }
   0x9   :  { %v4948_v24 = vld [vmem:[%s5896_s0 + $0x60] sm:$0xff]   ;;  %v4975_v25 = vld [vmem:[%s5896_s0 + $0x138] sm:$0xff]   ;;  %v4949_v28 = vld [vmem:[%s5896_s0 + $0x68] sm:$0xff]  }
   0xa   :  { %4512 = vmatmul.mubr.msk.bf16.vlgmr.msra.gmra.mrb[0].mxu0 %vm499_vm0, %v4937_v3  ;;  %4576 = vmatmul.mubr.msk.bf16.vlgmr.msra.gmra.mrb[0].mxu1 %vm499_vm0, %v4961_v10  ;;  %v4978_v26 = vld [vmem:[%s5896_s0 + $0x140] sm:$0xff]   ;;  %v4985_v27 = vld [vmem:[%s5899_s3 + $0x18] sm:$0xff]   ;;  %v4950_v29 = vld [vmem:[%s5896_s0 + $0x70] sm:$0xff]  }
   0xb   :  { %4515 = vmatprep.mubr.msk.bf16.mxu0 %vm499_vm0, %v4938_v4  ;;  %4640 = vmatpush3.bf16.msra.mxu1 %v4962_v11  ;;  %v4990_v30 = vld [vmem:[%s5899_s3 + $0x20] sm:$0xff]   ;;  %v4979_v31 = vld [vmem:[%s5896_s0 + $0x148] sm:$0xff]   ;;  %v4981_v32 = vld [vmem:[%s5896_s0 + $0x150] sm:$0xff]  }
   0xc   :  { %4579 = vmatprep.mubr.msk.bf16.mxu1 %vm499_vm0, %v4965_v14  ;;  %4641 = vmatprep.subr.bf16.mxu1 %v4971_v17  ;;  %v4995_v33 = vld [vmem:[%s5899_s3 + $0x28] sm:$0xff]   ;;  %v4951_v34 = vld [vmem:[%s5896_s0 + $0x78] sm:$0xff]   ;;  %v4952_v35 = vld [vmem:[%s5896_s0 + $0x80] sm:$0xff]  }
   0xd   :  { %v4982_v36 = vld [vmem:[%s5896_s0 + $0x158] sm:$0xff]   ;;  %v4983_v37 = vld [vmem:[%s5896_s0 + $0x160] sm:$0xff]   ;;  %v5000_v38 = vld [vmem:[%s5899_s3 + $0x30] sm:$0xff]  }
   0xe   :  { %v4953_v39 = vld [vmem:[%s5896_s0 + $0x88] sm:$0xff]   ;;  %v4954_v40 = vld [vmem:[%s5896_s0 + $0x90] sm:$0xff]   ;;  %v5005_v42 = vld [vmem:[%s5899_s3 + $0x38] sm:$0xff]  }
   0xf   :  { %4642 = vmatpush3.bf16.msra.mxu1 %v4971_v17  ;;  %v4984_v41 = vld [vmem:[%s5896_s0 + $0x168] sm:$0xff]   ;;  %v4986_v43 = vld [vmem:[%s5896_s0 + $0x170] sm:$0xff]   ;;  %v4955_v44 = vld [vmem:[%s5896_s0 + $0x98] sm:$0xff]  }
  0x10   :  { %4643 = vmatprep.subr.bf16.mxu1 %v4980_v23  ;;  %v4956_v45 = vld [vmem:[%s5896_s0 + $0xa0] sm:$0xff]  }
  0x12   :  { %4516 = vmatmul.mubr.msk.bf16.gmra.mrb[4].mxu0 %vm499_vm0, %v4939_v5  ;;  %4580 = vmatmul.mubr.msk.bf16.gmra.mrb[4].mxu1 %vm499_vm0, %v4966_v15 }
  0x13   :  { %4519 = vmatprep.mubr.msk.bf16.mxu0 %vm499_vm0, %v4940_v6  ;;  %4583 = vmatprep.mubr.msk.bf16.mxu1 %vm499_vm0, %v4969_v16 }
  0x14   :  { %4644 = vmatpush3.bf16.msra.mxu1 %v4980_v23 }
  0x15   :  { %4645 = vmatprep.subr.bf16.mxu1 %v4985_v27 }
  0x18   :  { %4646 = vmatpush3.bf16.msra.mxu1 %v4985_v27 }
  0x19   :  { %4647 = vmatprep.subr.bf16.mxu1 %v4990_v30 }
  0x1a   :  { %4520 = vmatmul.mubr.msk.bf16.gmra.mrb[8].mxu0 %vm499_vm0, %v4941_v7  ;;  %4584 = vmatmul.mubr.msk.bf16.gmra.mrb[8].mxu1 %vm499_vm0, %v4970_v20 }
  0x1b   :  { %4523 = vmatprep.mubr.msk.bf16.mxu0 %vm499_vm0, %v4942_v8  ;;  %4587 = vmatprep.mubr.msk.bf16.mxu1 %vm499_vm0, %v4974_v21 }
  0x1c   :  { %4648 = vmatpush3.bf16.msra.mxu1 %v4990_v30 }
  0x1d   :  { %4649 = vmatprep.subr.bf16.mxu1 %v4995_v33 }
  0x20   :  { %4650 = vmatpush3.bf16.msra.mxu1 %v4995_v33 }
  0x21   :  { %4651 = vmatprep.subr.bf16.mxu1 %v5000_v38 }
  0x22   :  { %4524 = vmatmul.mubr.msk.bf16.gmra.mrb[12].mxu0 %vm499_vm0, %v4943_v12  ;;  %4588 = vmatmul.mubr.msk.bf16.gmra.mrb[12].mxu1 %vm499_vm0, %v4975_v25 }
  0x23   :  { %4527 = vmatprep.mubr.msk.bf16.mxu0 %vm499_vm0, %v4944_v13  ;;  %4591 = vmatprep.mubr.msk.bf16.mxu1 %vm499_vm0, %v4978_v26 }
  0x24   :  { %4652 = vmatpush3.bf16.msra.mxu1 %v5000_v38 }
  0x25   :  { %4653 = vmatprep.subr.bf16.mxu1 %v5005_v42 }
  0x28   :  { %4654 = vmatpush3.bf16.msra.mxu1 %v5005_v42 }
  0x2a   :  { %4528 = vmatmul.mubr.msk.bf16.gmra.mrb[16].mxu0 %vm499_vm0, %v4945_v18  ;;  %4592 = vmatmul.mubr.msk.bf16.gmra.mrb[16].mxu1 %vm499_vm0, %v4979_v31 }
  0x2b   :  { %4531 = vmatprep.mubr.msk.bf16.mxu0 %vm499_vm0, %v4946_v19  ;;  %4595 = vmatprep.mubr.msk.bf16.mxu1 %vm499_vm0, %v4981_v32 }
  0x32   :  { %4532 = vmatmul.mubr.msk.bf16.gmra.mrb[20].mxu0 %vm499_vm0, %v4947_v22  ;;  %4596 = vmatmul.mubr.msk.bf16.gmra.mrb[20].mxu1 %vm499_vm0, %v4982_v36 }
  0x33   :  { %4535 = vmatprep.mubr.msk.bf16.mxu0 %vm499_vm0, %v4948_v24  ;;  %4599 = vmatprep.mubr.msk.bf16.mxu1 %vm499_vm0, %v4983_v37 }
  0x3a   :  { %4536 = vmatmul.mubr.msk.bf16.gmra.mrb[24].mxu0 %vm499_vm0, %v4949_v28  ;;  %4600 = vmatmul.mubr.msk.bf16.gmra.mrb[24].mxu1 %vm499_vm0, %v4984_v41 }
  0x3b   :  { %4539 = vmatprep.mubr.msk.bf16.mxu0 %vm499_vm0, %v4950_v29  ;;  %4603 = vmatprep.mubr.msk.bf16.mxu1 %vm499_vm0, %v4986_v43 }
  0x42   :  { %4540 = vmatmul.mubr.msk.bf16.gmra.mrb[28].mxu0 %vm499_vm0, %v4951_v34 }
  0x43   :  { %4543 = vmatprep.mubr.msk.bf16.mxu0 %vm499_vm0, %v4952_v35 }
  0x4a   :  { %4544 = vmatmul.mubr.msk.bf16.gmra.mrb[32].mxu0 %vm499_vm0, %v4953_v39 }
  0x4b   :  { %4547 = vmatprep.mubr.msk.bf16.mxu0 %vm499_vm0, %v4954_v40 }
  0x4c   :  { %12 = vsyncpa [#allocation3], 0  ;;  %v4987_v46 = vld [vmem:[%s5896_s0 + $0x178] sm:$0xff]   ;;  %v4988_v47 = vld [vmem:[%s5896_s0 + $0x180] sm:$0xff]  }
  0x4d   :  { %4604 = vmatmul.mubr.msk.bf16.gmra.mrb[28].mxu1 %vm499_vm0, %v4987_v46  ;;  %v4957_v48 = vld [vmem:[%s5896_s0 + $0xa8] sm:$0xff]   ;;  %v4958_v49 = vld [vmem:[%s5896_s0 + $0xb0] sm:$0xff]   ;;  %v4959_v52 = vld [vmem:[%s5896_s0 + $0xb8] sm:$0xff]  }
  0x4e   :  { %4607 = vmatprep.mubr.msk.bf16.mxu1 %vm499_vm0, %v4988_v47  ;;  %v4989_v50 = vld [vmem:[%s5896_s0 + $0x188] sm:$0xff]   ;;  %v4991_v51 = vld [vmem:[%s5896_s0 + $0x190] sm:$0xff]   ;;  %v4963_v53 = vld [vmem:[%s5896_s0 + $0xc0] sm:$0xff]  }
  0x4f   :  { %v4992_v54 = vld [vmem:[%s5896_s0 + $0x198] sm:$0xff]   ;;  %v4993_v55 = vld [vmem:[%s5896_s0 + $0x1a0] sm:$0xff]   ;;  %v4964_v56 = vld [vmem:[%s5896_s0 + $0xc8] sm:$0xff]  }
  0x50   :  { %v4967_v57 = vld [vmem:[%s5896_s0 + $0xd0] sm:$0xff]   ;;  %v4994_v58 = vld [vmem:[%s5896_s0 + $0x1a8] sm:$0xff]   ;;  %v4968_v60 = vld [vmem:[%s5896_s0 + $0xd8] sm:$0xff]  }
  0x51   :  { %v4996_v59 = vld [vmem:[%s5896_s0 + $0x1b0] sm:$0xff]   ;;  %v4972_v61 = vld [vmem:[%s5896_s0 + $0xe0] sm:$0xff]   ;;  %v4997_v62 = vld [vmem:[%s5896_s0 + $0x1b8] sm:$0xff]  }
  0x52   :  { %4548 = vmatmul.mubr.msk.bf16.gmra.mrb[36].mxu0 %vm499_vm0, %v4955_v44  ;;  %v4998_v63 = vld [vmem:[%s5896_s0 + $0x1c0] sm:$0xff]   ;;  %v4973_v0 = vld [vmem:[%s5896_s0 + $0xe8] sm:$0xff]   ;;  %v4976_v1 = vld [vmem:[%s5896_s0 + $0xf0] sm:$0xff]  }
  0x53   :  { %4551 = vmatprep.mubr.msk.bf16.mxu0 %vm499_vm0, %v4956_v45  ;;  %v4999_v2 = vld [vmem:[%s5896_s0 + $0x1c8] sm:$0xff]   ;;  %v5001_v3 = vld [vmem:[%s5896_s0 + $0x1d0] sm:$0xff]   ;;  %v4977_v4 = vld [vmem:[%s5896_s0 + $0xf8] sm:$0xff]  }
  0x54   :  { %v5002_v5 = vld [vmem:[%s5896_s0 + $0x1d8] sm:$0xff]   ;;  %v5003_v6 = vld [vmem:[%s5896_s0 + $0x1e0] sm:$0xff]   ;;  %v5004_v7 = vld [vmem:[%s5896_s0 + $0x1e8] sm:$0xff]  }
  0x55   :  { %4608 = vmatmul.mubr.msk.bf16.gmra.mrb[32].mxu1 %vm499_vm0, %v4989_v50  ;;  %v5006_v8 = vld [vmem:[%s5896_s0 + $0x1f0] sm:$0xff]   ;;  %v5007_v9 = vld [vmem:[%s5896_s0 + $0x1f8] sm:$0xff]   ;;  %v5008_v10 = vld [vmem:[%s5901_s5] sm:$0xff]  }
  0x56   :  { %4611 = vmatprep.mubr.msk.bf16.mxu1 %vm499_vm0, %v4991_v51  ;;  %4783 = vmatprep.subr.bf16.mxu0 %v5008_v10  ;;  %v5009_v11 = vld [vmem:[%s5901_s5 + $0x8] sm:$0xff]   ;;  %v5379_v12 = vld [vmem:[%s5898_s2] ss:$0 sm:$0xff]  ;;  %v5010_v21 = vld [vmem:[%s5901_s5 + $0x10] sm:$0xff]  }
  0x57   :  { %4784 = vmatpush3.bf16.msra.mxu0 %v5008_v10 }
  0x58   :  { %4785 = vmatprep.subr.bf16.mxu0 %v5009_v11 }
  0x5a   :  { %4552 = vmatmul.mubr.msk.bf16.gmra.mrb[40].mxu0 %vm499_vm0, %v4957_v48 }
  0x5b   :  { %4555 = vmatprep.mubr.msk.bf16.mxu0 %vm499_vm0, %v4958_v49  ;;  %4786 = vmatpush3.bf16.msra.mxu0 %v5009_v11 }
  0x5c   :  { %4787 = vmatprep.subr.bf16.mxu0 %v5010_v21 }
  0x5d   :  { %4612 = vmatmul.mubr.msk.bf16.gmra.mrb[36].mxu1 %vm499_vm0, %v4992_v54 }
  0x5e   :  { %4615 = vmatprep.mubr.msk.bf16.mxu1 %vm499_vm0, %v4993_v55 }
  0x5f   :  { %4788 = vmatpush3.bf16.msra.mxu0 %v5010_v21 }
  0x62   :  { %4556 = vmatmul.mubr.msk.bf16.gmra.mrb[44].mxu0 %vm499_vm0, %v4959_v52 }
  0x63   :  { %4559 = vmatprep.mubr.msk.bf16.mxu0 %vm499_vm0, %v4963_v53  ;;  %v5011_v53 = vld [vmem:[%s5901_s5 + $0x18] sm:$0xff]  }
  0x64   :  { %4789 = vmatprep.subr.bf16.mxu0 %v5011_v53 }
  0x65   :  { %4616 = vmatmul.mubr.msk.bf16.gmra.mrb[40].mxu1 %vm499_vm0, %v4994_v58  ;;  %4790 = vmatpush3.bf16.msra.mxu0 %v5011_v53 }
  0x66   :  { %4619 = vmatprep.mubr.msk.bf16.mxu1 %vm499_vm0, %v4996_v59 }
  0x6a   :  { %4560 = vmatmul.mubr.msk.bf16.gmra.mrb[48].mxu0 %vm499_vm0, %v4964_v56 }
  0x6b   :  { %4563 = vmatprep.mubr.msk.bf16.mxu0 %vm499_vm0, %v4967_v57 }
  0x6d   :  { %4620 = vmatmul.mubr.msk.bf16.gmra.mrb[44].mxu1 %vm499_vm0, %v4997_v62 }
  0x6e   :  { %4623 = vmatprep.mubr.msk.bf16.mxu1 %vm499_vm0, %v4998_v63 }
  0x72   :  { %4564 = vmatmul.mubr.msk.bf16.gmra.mrb[52].mxu0 %vm499_vm0, %v4968_v60 }
  0x73   :  { %4567 = vmatprep.mubr.msk.bf16.mxu0 %vm499_vm0, %v4972_v61 }
  0x75   :  { %4624 = vmatmul.mubr.msk.bf16.gmra.mrb[48].mxu1 %vm499_vm0, %v4999_v2 }
  0x76   :  { %4627 = vmatprep.mubr.msk.bf16.mxu1 %vm499_vm0, %v5001_v3 }
  0x7a   :  { %4568 = vmatmul.mubr.msk.bf16.gmra.mrb[56].mxu0 %vm499_vm0, %v4973_v0 }
  0x7b   :  { %4571 = vmatprep.mubr.msk.bf16.mxu0 %vm499_vm0, %v4976_v1 }
  0x7d   :  { %4628 = vmatmul.mubr.msk.bf16.gmra.mrb[52].mxu1 %vm499_vm0, %v5002_v5 }
  0x7e   :  { %4631 = vmatprep.mubr.msk.bf16.mxu1 %vm499_vm0, %v5003_v6 }
  0x82   :  { %4572 = vmatmul.mubr.msk.bf16.gmra.mrb[60].mxu0 %vm499_vm0, %v4977_v4 }
  0x85   :  { %4632 = vmatmul.mubr.msk.bf16.gmra.mrb[56].mxu1 %vm499_vm0, %v5004_v7 }
  0x86   :  { %4635 = vmatprep.mubr.msk.bf16.mxu1 %vm499_vm0, %v5006_v8 }
  0x8d   :  { %4636 = vmatmul.mubr.msk.bf16.gmra.mrb[60].mxu1 %vm499_vm0, %v5007_v9 }
  0xdd   :  { %v4513_v13 = vpop.f32.mrb[0].mxu0  ;;  %v4577_v49 = vpop.f32.mrb[0].mxu1 }
  0xde   :  { %v735_v14 = vadd.f32 %v4513_v13, %v5379_v12  ;;  %v726_v15 = vpop.f32.mrb[1].mxu0  ;;  %v991_v51 = vadd.f32 %v4577_v49, %v5379_v12  ;;  %v982_v52 = vpop.f32.mrb[1].mxu1 }
  0xdf   :  { %v727_v16 = vadd.f32 %v5379_v12, %v726_v15  ;;  %v4514_v17 = vpop.f32.mrb[2].mxu0  ;;  %v983_v56 = vadd.f32 %v5379_v12, %v982_v52  ;;  %v4578_v57 = vpop.f32.mrb[2].mxu1 }
  0xe0   :  { %v738_v18 = vadd.f32 %v4514_v17, %v5379_v12  ;;  %v729_v19 = vpop.f32.mrb[3].mxu0  ;;  %v1239_v22 = vmax.f32 %v735_v14, 0.0  ;;  %v1303_v60 = vmax.f32 %v991_v51, 0.0  ;;  %v994_v61 = vadd.f32 %v4578_v57, %v5379_v12  ;;  %v985_v62 = vpop.f32.mrb[3].mxu1 }
  0xe1   :  { %v730_v20 = vadd.f32 %v5379_v12, %v729_v19  ;;  %v1237_v24 = vmax.f32 %v727_v16, 0.0  ;;  %v1301_v0 = vmax.f32 %v983_v56, 0.0  ;;  %v986_v1 = vadd.f32 %v5379_v12, %v985_v62 }
  0xe2   :  { %v1240_v23 = vmax.f32 %v738_v18, 0.0  ;;  %v1304_v4 = vmax.f32 %v994_v61, 0.0 }
  0xe3   :  { %v1238_v25 = vmax.f32 %v730_v20, 0.0  ;;  %v1302_v7 = vmax.f32 %v986_v1, 0.0 }
  0xe4   :  { %v1366_v26 = vpack.c.bf16 %v1240_v23, %v1239_v22  ;;  %v5405_v10 = vpack.c.bf16 %v1304_v4, %v1303_v60 }
  0xe5   :  { %v1365_v27 = vpack.c.bf16 %v1238_v25, %v1237_v24  ;;  %v4517_v28 = vpop.f32.mrb[4].mxu0  ;;  %v5408_v14 = vpack.c.bf16 %v1302_v7, %v1301_v0  ;;  %v4581_v15 = vpop.f32.mrb[4].mxu1 }
  0xe6   :  { %v751_v29 = vadd.f32 %v4517_v28, %v5379_v12  ;;  %v742_v30 = vpop.f32.mrb[5].mxu0  ;;  %v1007_v17 = vadd.f32 %v4581_v15, %v5379_v12  ;;  %v998_v18 = vpop.f32.mrb[5].mxu1 }
  0xe7   :  { %v743_v31 = vadd.f32 %v5379_v12, %v742_v30  ;;  %v4518_v32 = vpop.f32.mrb[6].mxu0  ;;  %4655 = vmatprep.mubr.bf16.mxu1 %v1365_v27  ;;  %v999_v21 = vadd.f32 %v5379_v12, %v998_v18  ;;  %v4582_v22 = vpop.f32.mrb[6].mxu1 }
  0xe8   :  { %v754_v33 = vadd.f32 %v4518_v32, %v5379_v12  ;;  %v745_v34 = vpop.f32.mrb[7].mxu0  ;;  %4656 = vmatmul.mubr.bf16.vlgmr.msra.gmra.mrb[64].mxu1 %v1366_v26  ;;  %v1243_v36 = vmax.f32 %v751_v29, 0.0  ;;  %v1307_v25 = vmax.f32 %v1007_v17, 0.0  ;;  %v1010_v26 = vadd.f32 %v4582_v22, %v5379_v12  ;;  %v1001_v27 = vpop.f32.mrb[7].mxu1 }
  0xe9   :  { %v746_v35 = vadd.f32 %v5379_v12, %v745_v34  ;;  %v1241_v38 = vmax.f32 %v743_v31, 0.0  ;;  %v1305_v29 = vmax.f32 %v999_v21, 0.0  ;;  %v1002_v30 = vadd.f32 %v5379_v12, %v1001_v27 }
  0xea   :  { %v1244_v37 = vmax.f32 %v754_v33, 0.0  ;;  %v1308_v33 = vmax.f32 %v1010_v26, 0.0 }
  0xeb   :  { %v1242_v39 = vmax.f32 %v746_v35, 0.0 }
  0xec   :  { %v1368_v40 = vpack.c.bf16 %v1244_v37, %v1243_v36  ;;  %v1306_v36 = vmax.f32 %v1002_v30, 0.0 }
  0xed   :  { %v1367_v41 = vpack.c.bf16 %v1242_v39, %v1241_v38  ;;  %v4521_v42 = vpop.f32.mrb[8].mxu0  ;;  %v5417_v39 = vpack.c.bf16 %v1308_v33, %v1307_v25 }
  0xee   :  { %v767_v43 = vadd.f32 %v4521_v42, %v5379_v12  ;;  %v758_v44 = vpop.f32.mrb[9].mxu0  ;;  %v5420_v42 = vpack.c.bf16 %v1306_v36, %v1305_v29 }
  0xef   :  { %v759_v45 = vadd.f32 %v5379_v12, %v758_v44  ;;  %v4522_v46 = vpop.f32.mrb[10].mxu0  ;;  %4659 = vmatprep.mubr.bf16.mxu1 %v1367_v41 }
  0xf0   :  { %v770_v47 = vadd.f32 %v4522_v46, %v5379_v12  ;;  %v761_v48 = vpop.f32.mrb[11].mxu0  ;;  %4660 = vmatmul.mubr.bf16.gmra.mrb[68].mxu1 %v1368_v40  ;;  %v1247_v54 = vmax.f32 %v767_v43, 0.0  ;;  %v4585_v43 = vpop.f32.mrb[8].mxu1 }
  0xf1   :  { %v762_v50 = vadd.f32 %v5379_v12, %v761_v48  ;;  %v1245_v58 = vmax.f32 %v759_v45, 0.0  ;;  %v1023_v45 = vadd.f32 %v4585_v43, %v5379_v12  ;;  %v1014_v46 = vpop.f32.mrb[9].mxu1 }
  0xf2   :  { %v1248_v55 = vmax.f32 %v770_v47, 0.0  ;;  %v5012_v47 = vld [vmem:[%s5901_s5 + $0x20] sm:$0xff]   ;;  %v4586_v51 = vpop.f32.mrb[10].mxu1 }
  0xf3   :  { %v1246_v59 = vmax.f32 %v762_v50, 0.0  ;;  %v1015_v50 = vadd.f32 %v5379_v12, %v1014_v46  ;;  %v1017_v56 = vpop.f32.mrb[11].mxu1  ;;  %4791 = vmatprep.subr.bf16.mxu0 %v5012_v47 }
  0xf4   :  { %v1370_v63 = vpack.c.bf16 %v1248_v55, %v1247_v54  ;;  %v1311_v54 = vmax.f32 %v1023_v45, 0.0  ;;  %v1026_v55 = vadd.f32 %v4586_v51, %v5379_v12  ;;  %4792 = vmatpush3.bf16.msra.mxu0 %v5012_v47  ;;  %v5013_v45 = vld [vmem:[%s5901_s5 + $0x28] sm:$0xff]  }
  0xf5   :  { %v1369_v2 = vpack.c.bf16 %v1246_v59, %v1245_v58  ;;  %v4525_v3 = vpop.f32.mrb[12].mxu0  ;;  %v1309_v58 = vmax.f32 %v1015_v50, 0.0  ;;  %v1018_v59 = vadd.f32 %v5379_v12, %v1017_v56  ;;  %4793 = vmatprep.subr.bf16.mxu0 %v5013_v45 }
  0xf6   :  { %v783_v5 = vadd.f32 %v4525_v3, %v5379_v12  ;;  %v774_v6 = vpop.f32.mrb[13].mxu0  ;;  %v1312_v62 = vmax.f32 %v1026_v55, 0.0 }
  0xf7   :  { %v775_v8 = vadd.f32 %v5379_v12, %v774_v6  ;;  %v4526_v9 = vpop.f32.mrb[14].mxu0  ;;  %4663 = vmatprep.mubr.bf16.mxu1 %v1369_v2  ;;  %v1310_v1 = vmax.f32 %v1018_v59, 0.0 }
  0xf8   :  { %v786_v11 = vadd.f32 %v4526_v9, %v5379_v12  ;;  %v777_v13 = vpop.f32.mrb[15].mxu0  ;;  %4664 = vmatmul.mubr.bf16.gmra.mrb[72].mxu1 %v1370_v63  ;;  %v1251_v19 = vmax.f32 %v783_v5, 0.0  ;;  %v5432_v4 = vpack.c.bf16 %v1312_v62, %v1311_v54  ;;  %4794 = vmatpush3.bf16.msra.mxu0 %v5013_v45 }
  0xf9   :  { %v778_v16 = vadd.f32 %v5379_v12, %v777_v13  ;;  %v1249_v23 = vmax.f32 %v775_v8, 0.0  ;;  %v5435_v7 = vpack.c.bf16 %v1310_v1, %v1309_v58  ;;  %v4589_v8 = vpop.f32.mrb[12].mxu1 }
  0xfa   :  { %v1252_v20 = vmax.f32 %v786_v11, 0.0  ;;  %v1039_v11 = vadd.f32 %v4589_v8, %v5379_v12  ;;  %v1030_v13 = vpop.f32.mrb[13].mxu1 }
  0xfb   :  { %v1250_v24 = vmax.f32 %v778_v16, 0.0  ;;  %v1031_v17 = vadd.f32 %v5379_v12, %v1030_v13  ;;  %v4590_v18 = vpop.f32.mrb[14].mxu1 }
  0xfc   :  { %v1372_v28 = vpack.c.bf16 %v1252_v20, %v1251_v19  ;;  %v1315_v21 = vmax.f32 %v1039_v11, 0.0  ;;  %v1042_v22 = vadd.f32 %v4590_v18, %v5379_v12 }
  0xfd   :  { %v1371_v31 = vpack.c.bf16 %v1250_v24, %v1249_v23  ;;  %v4529_v32 = vpop.f32.mrb[16].mxu0  ;;  %v1033_v23 = vpop.f32.mrb[15].mxu1  ;;  %v1313_v25 = vmax.f32 %v1031_v17, 0.0 }
  0xfe   :  { %v799_v34 = vadd.f32 %v4529_v32, %v5379_v12  ;;  %v790_v35 = vpop.f32.mrb[17].mxu0  ;;  %v1034_v26 = vadd.f32 %v5379_v12, %v1033_v23  ;;  %v1316_v29 = vmax.f32 %v1042_v22, 0.0 }
  0xff   :  { %v791_v37 = vadd.f32 %v5379_v12, %v790_v35  ;;  %v4530_v38 = vpop.f32.mrb[18].mxu0  ;;  %4667 = vmatprep.mubr.bf16.mxu1 %v1371_v31 }
 0x100   :  { %v802_v40 = vadd.f32 %v4530_v38, %v5379_v12  ;;  %v793_v41 = vpop.f32.mrb[19].mxu0  ;;  %4668 = vmatmul.mubr.bf16.gmra.mrb[76].mxu1 %v1372_v28  ;;  %v1255_v48 = vmax.f32 %v799_v34, 0.0  ;;  %v1314_v32 = vmax.f32 %v1034_v26, 0.0  ;;  %v5444_v35 = vpack.c.bf16 %v1316_v29, %v1315_v21 }
 0x101   :  { %v794_v44 = vadd.f32 %v5379_v12, %v793_v41  ;;  %v1253_v52 = vmax.f32 %v791_v37, 0.0 }
 0x102   :  { %v1256_v49 = vmax.f32 %v802_v40, 0.0  ;;  %v5447_v38 = vpack.c.bf16 %v1314_v32, %v1313_v25  ;;  %v4593_v40 = vpop.f32.mrb[16].mxu1 }
 0x103   :  { %v1254_v53 = vmax.f32 %v794_v44, 0.0  ;;  %v1055_v43 = vadd.f32 %v4593_v40, %v5379_v12  ;;  %v1046_v44 = vpop.f32.mrb[17].mxu1 }
 0x104   :  { %v1374_v57 = vpack.c.bf16 %v1256_v49, %v1255_v48  ;;  %v1047_v48 = vadd.f32 %v5379_v12, %v1046_v44  ;;  %v4594_v49 = vpop.f32.mrb[18].mxu1 }
 0x105   :  { %v1373_v60 = vpack.c.bf16 %v1254_v53, %v1253_v52  ;;  %v4533_v61 = vpop.f32.mrb[20].mxu0  ;;  %v1319_v52 = vmax.f32 %v1055_v43, 0.0  ;;  %v1058_v53 = vadd.f32 %v4594_v49, %v5379_v12  ;;  %v1049_v54 = vpop.f32.mrb[19].mxu1 }
 0x106   :  { %v815_v63 = vadd.f32 %v4533_v61, %v5379_v12  ;;  %v806_v0 = vpop.f32.mrb[21].mxu0  ;;  %v1317_v56 = vmax.f32 %v1047_v48, 0.0  ;;  %v4597_v8 = vpop.f32.mrb[20].mxu1 }
 0x107   :  { %v807_v2 = vadd.f32 %v5379_v12, %v806_v0  ;;  %v4534_v3 = vpop.f32.mrb[22].mxu0  ;;  %4671 = vmatprep.mubr.bf16.mxu1 %v1373_v60  ;;  %v1320_v60 = vmax.f32 %v1058_v53, 0.0  ;;  %v1071_v11 = vadd.f32 %v4597_v8, %v5379_v12  ;;  %v1062_v13 = vpop.f32.mrb[21].mxu1 }
 0x108   :  { %v818_v5 = vadd.f32 %v4534_v3, %v5379_v12  ;;  %v809_v6 = vpop.f32.mrb[23].mxu0  ;;  %4672 = vmatmul.mubr.bf16.gmra.mrb[80].mxu1 %v1374_v57  ;;  %v1259_v15 = vmax.f32 %v815_v63, 0.0  ;;  %v1050_v57 = vadd.f32 %v5379_v12, %v1049_v54  ;;  %v1063_v17 = vadd.f32 %v5379_v12, %v1062_v13  ;;  %v4598_v18 = vpop.f32.mrb[22].mxu1 }
 0x109   :  { %v810_v9 = vadd.f32 %v5379_v12, %v809_v6  ;;  %v1257_v19 = vmax.f32 %v807_v2, 0.0  ;;  %v5459_v2 = vpack.c.bf16 %v1320_v60, %v1319_v52  ;;  %v1323_v21 = vmax.f32 %v1071_v11, 0.0  ;;  %v1065_v23 = vpop.f32.mrb[23].mxu1 }
 0x10a   :  { %v1260_v16 = vmax.f32 %v818_v5, 0.0  ;;  %v1318_v63 = vmax.f32 %v1050_v57, 0.0  ;;  %v1074_v22 = vadd.f32 %v4598_v18, %v5379_v12  ;;  %v1321_v25 = vmax.f32 %v1063_v17, 0.0 }
 0x10b   :  { %v1258_v20 = vmax.f32 %v810_v9, 0.0  ;;  %v1066_v26 = vadd.f32 %v5379_v12, %v1065_v23 }
 0x10c   :  { %v1376_v24 = vpack.c.bf16 %v1260_v16, %v1259_v15  ;;  %v5462_v6 = vpack.c.bf16 %v1318_v63, %v1317_v56  ;;  %v1324_v29 = vmax.f32 %v1074_v22, 0.0 }
 0x10d   :  { %v1375_v27 = vpack.c.bf16 %v1258_v20, %v1257_v19  ;;  %v4537_v28 = vpop.f32.mrb[24].mxu0  ;;  %v1322_v32 = vmax.f32 %v1066_v26, 0.0  ;;  %v4601_v43 = vpop.f32.mrb[24].mxu1 }
 0x10e   :  { %v831_v30 = vadd.f32 %v4537_v28, %v5379_v12  ;;  %v822_v31 = vpop.f32.mrb[25].mxu0  ;;  %v1087_v45 = vadd.f32 %v4601_v43, %v5379_v12 }
 0x10f   :  { %v823_v33 = vadd.f32 %v5379_v12, %v822_v31  ;;  %v4538_v34 = vpop.f32.mrb[26].mxu0  ;;  %4675 = vmatprep.mubr.bf16.mxu1 %v1375_v27 }
 0x110   :  { %v834_v36 = vadd.f32 %v4538_v34, %v5379_v12  ;;  %v825_v37 = vpop.f32.mrb[27].mxu0  ;;  %4676 = vmatmul.mubr.bf16.gmra.mrb[84].mxu1 %v1376_v24  ;;  %v1263_v46 = vmax.f32 %v831_v30, 0.0  ;;  %v1327_v54 = vmax.f32 %v1087_v45, 0.0 }
 0x111   :  { %v826_v41 = vadd.f32 %v5379_v12, %v825_v37  ;;  %v1261_v50 = vmax.f32 %v823_v33, 0.0 }
 0x112   :  { %v1264_v47 = vmax.f32 %v834_v36, 0.0  ;;  %v5471_v36 = vpack.c.bf16 %v1324_v29, %v1323_v21 }
 0x113   :  { %v1262_v51 = vmax.f32 %v826_v41, 0.0  ;;  %v5474_v41 = vpack.c.bf16 %v1322_v32, %v1321_v25 }
 0x114   :  { %v1378_v55 = vpack.c.bf16 %v1264_v47, %v1263_v46  ;;  %v1078_v46 = vpop.f32.mrb[25].mxu1  ;;  %v5014_v47 = vld [vmem:[%s5901_s5 + $0x30] sm:$0xff]  }
 0x115   :  { %v1377_v58 = vpack.c.bf16 %v1262_v51, %v1261_v50  ;;  %v4541_v59 = vpop.f32.mrb[28].mxu0  ;;  %v1079_v50 = vadd.f32 %v5379_v12, %v1078_v46  ;;  %v4602_v51 = vpop.f32.mrb[26].mxu1  ;;  %4795 = vmatprep.subr.bf16.mxu0 %v5014_v47 }
 0x116   :  { %v847_v61 = vadd.f32 %v4541_v59, %v5379_v12  ;;  %v838_v62 = vpop.f32.mrb[29].mxu0  ;;  %v1081_v56 = vpop.f32.mrb[27].mxu1  ;;  %4796 = vmatpush3.bf16.msra.mxu0 %v5014_v47 }
 0x117   :  { %v839_v0 = vadd.f32 %v5379_v12, %v838_v62  ;;  %v4542_v1 = vpop.f32.mrb[30].mxu0  ;;  %4679 = vmatprep.mubr.bf16.mxu1 %v1377_v58  ;;  %v1325_v58 = vmax.f32 %v1079_v50, 0.0  ;;  %v1082_v59 = vadd.f32 %v5379_v12, %v1081_v56 }
 0x118   :  { %v850_v3 = vadd.f32 %v4542_v1, %v5379_v12  ;;  %v841_v5 = vpop.f32.mrb[31].mxu0  ;;  %4680 = vmatmul.mubr.bf16.gmra.mrb[88].mxu1 %v1378_v55  ;;  %v1267_v15 = vmax.f32 %v847_v61, 0.0  ;;  %v1090_v55 = vadd.f32 %v4602_v51, %v5379_v12 }
 0x119   :  { %v842_v9 = vadd.f32 %v5379_v12, %v841_v5  ;;  %v1265_v19 = vmax.f32 %v839_v0, 0.0  ;;  %v1326_v1 = vmax.f32 %v1082_v59, 0.0 }
 0x11a   :  { %v1268_v16 = vmax.f32 %v850_v3, 0.0  ;;  %v1328_v62 = vmax.f32 %v1090_v55, 0.0 }
 0x11b   :  { %v1266_v20 = vmax.f32 %v842_v9, 0.0  ;;  %v5489_v13 = vpack.c.bf16 %v1326_v1, %v1325_v58 }
 0x11c   :  { %v1380_v24 = vpack.c.bf16 %v1268_v16, %v1267_v15  ;;  %v5486_v8 = vpack.c.bf16 %v1328_v62, %v1327_v54 }
 0x11d   :  { %v1379_v27 = vpack.c.bf16 %v1266_v20, %v1265_v19  ;;  %v4545_v28 = vpop.f32.mrb[32].mxu0 }
 0x11e   :  { %v863_v30 = vadd.f32 %v4545_v28, %v5379_v12  ;;  %v854_v31 = vpop.f32.mrb[33].mxu0 }
 0x11f   :  { %v855_v33 = vadd.f32 %v5379_v12, %v854_v31  ;;  %v4546_v34 = vpop.f32.mrb[34].mxu0  ;;  %4683 = vmatprep.mubr.bf16.mxu1 %v1379_v27 }
 0x120   :  { %v866_v37 = vadd.f32 %v4546_v34, %v5379_v12  ;;  %v857_v40 = vpop.f32.mrb[35].mxu0  ;;  %4684 = vmatmul.mubr.bf16.gmra.mrb[92].mxu1 %v1380_v24  ;;  %v1271_v48 = vmax.f32 %v863_v30, 0.0  ;;  %v4605_v15 = vpop.f32.mrb[28].mxu1 }
 0x121   :  { %v858_v44 = vadd.f32 %v5379_v12, %v857_v40  ;;  %v1269_v52 = vmax.f32 %v855_v33, 0.0  ;;  %v1103_v17 = vadd.f32 %v4605_v15, %v5379_v12  ;;  %v1094_v18 = vpop.f32.mrb[29].mxu1 }
 0x122   :  { %v1272_v49 = vmax.f32 %v866_v37, 0.0  ;;  %v1095_v21 = vadd.f32 %v5379_v12, %v1094_v18  ;;  %v4606_v22 = vpop.f32.mrb[30].mxu1 }
 0x123   :  { %v1270_v53 = vmax.f32 %v858_v44, 0.0  ;;  %v1331_v25 = vmax.f32 %v1103_v17, 0.0  ;;  %v1106_v26 = vadd.f32 %v4606_v22, %v5379_v12  ;;  %v1097_v27 = vpop.f32.mrb[31].mxu1 }
 0x124   :  { %v1382_v57 = vpack.c.bf16 %v1272_v49, %v1271_v48  ;;  %v1329_v29 = vmax.f32 %v1095_v21, 0.0  ;;  %v1098_v30 = vadd.f32 %v5379_v12, %v1097_v27 }
 0x125   :  { %v1381_v60 = vpack.c.bf16 %v1270_v53, %v1269_v52  ;;  %v4549_v61 = vpop.f32.mrb[36].mxu0  ;;  %v1332_v33 = vmax.f32 %v1106_v26, 0.0  ;;  %v5015_v53 = vld [vmem:[%s5901_s5 + $0x38] sm:$0xff]  }
 0x126   :  { %v879_v63 = vadd.f32 %v4549_v61, %v5379_v12  ;;  %v870_v0 = vpop.f32.mrb[37].mxu0  ;;  %v1330_v40 = vmax.f32 %v1098_v30, 0.0  ;;  %4797 = vmatprep.subr.bf16.mxu0 %v5015_v53 }
 0x127   :  { %v871_v3 = vadd.f32 %v5379_v12, %v870_v0  ;;  %v4550_v5 = vpop.f32.mrb[38].mxu0  ;;  %4687 = vmatprep.mubr.bf16.mxu1 %v1381_v60  ;;  %v5498_v45 = vpack.c.bf16 %v1332_v33, %v1331_v25  ;;  %4798 = vmatpush3.bf16.msra.mxu0 %v5015_v53 }
 0x128   :  { %v882_v9 = vadd.f32 %v4550_v5, %v5379_v12  ;;  %v873_v11 = vpop.f32.mrb[39].mxu0  ;;  %4688 = vmatmul.mubr.bf16.gmra.mrb[96].mxu1 %v1382_v57  ;;  %v1275_v19 = vmax.f32 %v879_v63, 0.0  ;;  %v5501_v48 = vpack.c.bf16 %v1330_v40, %v1329_v29  ;;  %v4609_v49 = vpop.f32.mrb[32].mxu1 }
 0x129   :  { %v874_v16 = vadd.f32 %v5379_v12, %v873_v11  ;;  %v1273_v23 = vmax.f32 %v871_v3, 0.0  ;;  %v1119_v51 = vadd.f32 %v4609_v49, %v5379_v12  ;;  %v1110_v52 = vpop.f32.mrb[33].mxu1 }
 0x12a   :  { %v1276_v20 = vmax.f32 %v882_v9, 0.0  ;;  %v1111_v56 = vadd.f32 %v5379_v12, %v1110_v52  ;;  %v4610_v57 = vpop.f32.mrb[34].mxu1 }
 0x12b   :  { %v1274_v24 = vmax.f32 %v874_v16, 0.0  ;;  %v1335_v60 = vmax.f32 %v1119_v51, 0.0  ;;  %v1122_v61 = vadd.f32 %v4610_v57, %v5379_v12  ;;  %v1113_v62 = vpop.f32.mrb[35].mxu1 }
 0x12c   :  { %v1384_v28 = vpack.c.bf16 %v1276_v20, %v1275_v19  ;;  %v1333_v0 = vmax.f32 %v1111_v56, 0.0  ;;  %v1114_v1 = vadd.f32 %v5379_v12, %v1113_v62 }
 0x12d   :  { %v1383_v31 = vpack.c.bf16 %v1274_v24, %v1273_v23  ;;  %v4553_v32 = vpop.f32.mrb[40].mxu0  ;;  %v1336_v9 = vmax.f32 %v1122_v61, 0.0 }
 0x12e   :  { %v895_v34 = vadd.f32 %v4553_v32, %v5379_v12  ;;  %v886_v37 = vpop.f32.mrb[41].mxu0  ;;  %v1334_v16 = vmax.f32 %v1114_v1, 0.0 }
 0x12f   :  { %v887_v43 = vadd.f32 %v5379_v12, %v886_v37  ;;  %v4554_v44 = vpop.f32.mrb[42].mxu0  ;;  %4691 = vmatprep.mubr.bf16.mxu1 %v1383_v31  ;;  %v5513_v19 = vpack.c.bf16 %v1336_v9, %v1335_v60 }
 0x130   :  { %v898_v46 = vadd.f32 %v4554_v44, %v5379_v12  ;;  %v889_v47 = vpop.f32.mrb[43].mxu0  ;;  %4692 = vmatmul.mubr.bf16.gmra.mrb[100].mxu1 %v1384_v28  ;;  %v1279_v54 = vmax.f32 %v895_v34, 0.0  ;;  %v5516_v22 = vpack.c.bf16 %v1334_v16, %v1333_v0  ;;  %v4613_v23 = vpop.f32.mrb[36].mxu1 }
 0x131   :  { %v890_v50 = vadd.f32 %v5379_v12, %v889_v47  ;;  %v1277_v58 = vmax.f32 %v887_v43, 0.0  ;;  %v1135_v25 = vadd.f32 %v4613_v23, %v5379_v12  ;;  %v1126_v26 = vpop.f32.mrb[37].mxu1 }
 0x132   :  { %v1280_v55 = vmax.f32 %v898_v46, 0.0  ;;  %v1127_v29 = vadd.f32 %v5379_v12, %v1126_v26  ;;  %v4614_v30 = vpop.f32.mrb[38].mxu1 }
 0x133   :  { %v1278_v59 = vmax.f32 %v890_v50, 0.0  ;;  %v1339_v33 = vmax.f32 %v1135_v25, 0.0  ;;  %v1138_v34 = vadd.f32 %v4614_v30, %v5379_v12  ;;  %v1129_v37 = vpop.f32.mrb[39].mxu1 }
 0x134   :  { %v1386_v63 = vpack.c.bf16 %v1280_v55, %v1279_v54  ;;  %v1337_v43 = vmax.f32 %v1127_v29, 0.0  ;;  %v1130_v44 = vadd.f32 %v5379_v12, %v1129_v37 }
 0x135   :  { %v1385_v3 = vpack.c.bf16 %v1278_v59, %v1277_v58  ;;  %v4557_v5 = vpop.f32.mrb[44].mxu0  ;;  %v1340_v49 = vmax.f32 %v1138_v34, 0.0 }
 0x136   :  { %v911_v11 = vadd.f32 %v4557_v5, %v5379_v12  ;;  %v902_v15 = vpop.f32.mrb[45].mxu0  ;;  %v1338_v52 = vmax.f32 %v1130_v44, 0.0 }
 0x137   :  { %v903_v17 = vadd.f32 %v5379_v12, %v902_v15  ;;  %v4558_v18 = vpop.f32.mrb[46].mxu0  ;;  %4695 = vmatprep.mubr.bf16.mxu1 %v1385_v3  ;;  %v5525_v55 = vpack.c.bf16 %v1340_v49, %v1339_v33 }
 0x138   :  { %v914_v20 = vadd.f32 %v4558_v18, %v5379_v12  ;;  %v905_v21 = vpop.f32.mrb[47].mxu0  ;;  %4696 = vmatmul.mubr.bf16.gmra.mrb[104].mxu1 %v1386_v63  ;;  %v1283_v27 = vmax.f32 %v911_v11, 0.0  ;;  %v5528_v58 = vpack.c.bf16 %v1338_v52, %v1337_v43  ;;  %v4617_v59 = vpop.f32.mrb[40].mxu1 }
 0x139   :  { %v906_v24 = vadd.f32 %v5379_v12, %v905_v21  ;;  %v1281_v31 = vmax.f32 %v903_v17, 0.0  ;;  %v1151_v61 = vadd.f32 %v4617_v59, %v5379_v12  ;;  %v1142_v62 = vpop.f32.mrb[41].mxu1 }
 0x13a   :  { %v1284_v28 = vmax.f32 %v914_v20, 0.0  ;;  %v1143_v1 = vadd.f32 %v5379_v12, %v1142_v62  ;;  %v4618_v3 = vpop.f32.mrb[42].mxu1 }
 0x13b   :  { %v1282_v32 = vmax.f32 %v906_v24, 0.0  ;;  %v1343_v11 = vmax.f32 %v1151_v61, 0.0  ;;  %v1154_v15 = vadd.f32 %v4618_v3, %v5379_v12  ;;  %v1145_v16 = vpop.f32.mrb[43].mxu1 }
 0x13c   :  { %v1388_v40 = vpack.c.bf16 %v1284_v28, %v1283_v27  ;;  %v1341_v18 = vmax.f32 %v1143_v1, 0.0  ;;  %v1146_v20 = vadd.f32 %v5379_v12, %v1145_v16 }
 0x13d   :  { %v1387_v46 = vpack.c.bf16 %v1282_v32, %v1281_v31  ;;  %v4561_v47 = vpop.f32.mrb[48].mxu0  ;;  %v1344_v24 = vmax.f32 %v1154_v15, 0.0 }
 0x13e   :  { %v927_v50 = vadd.f32 %v4561_v47, %v5379_v12  ;;  %v918_v51 = vpop.f32.mrb[49].mxu0  ;;  %v1342_v27 = vmax.f32 %v1146_v20, 0.0 }
 0x13f   :  { %v919_v53 = vadd.f32 %v5379_v12, %v918_v51  ;;  %v4562_v54 = vpop.f32.mrb[50].mxu0  ;;  %4699 = vmatprep.mubr.bf16.mxu1 %v1387_v46  ;;  %v5537_v30 = vpack.c.bf16 %v1344_v24, %v1343_v11 }
 0x140   :  { %v930_v56 = vadd.f32 %v4562_v54, %v5379_v12  ;;  %v921_v57 = vpop.f32.mrb[51].mxu0  ;;  %4700 = vmatmul.mubr.bf16.gmra.mrb[108].mxu1 %v1388_v40  ;;  %v1287_v63 = vmax.f32 %v927_v50, 0.0  ;;  %v5540_v33 = vpack.c.bf16 %v1342_v27, %v1341_v18  ;;  %v4621_v34 = vpop.f32.mrb[44].mxu1 }
 0x141   :  { %v922_v60 = vadd.f32 %v5379_v12, %v921_v57  ;;  %v1285_v5 = vmax.f32 %v919_v53, 0.0  ;;  %v1167_v40 = vadd.f32 %v4621_v34, %v5379_v12  ;;  %v1158_v43 = vpop.f32.mrb[45].mxu1 }
 0x142   :  { %v1288_v0 = vmax.f32 %v930_v56, 0.0  ;;  %v1159_v47 = vadd.f32 %v5379_v12, %v1158_v43  ;;  %v4622_v49 = vpop.f32.mrb[46].mxu1 }
 0x143   :  { %v1286_v9 = vmax.f32 %v922_v60, 0.0  ;;  %v1347_v52 = vmax.f32 %v1167_v40, 0.0  ;;  %v1170_v53 = vadd.f32 %v4622_v49, %v5379_v12  ;;  %v1161_v54 = vpop.f32.mrb[47].mxu1 }
 0x144   :  { %v1390_v17 = vpack.c.bf16 %v1288_v0, %v1287_v63  ;;  %v1345_v57 = vmax.f32 %v1159_v47, 0.0  ;;  %v1162_v59 = vadd.f32 %v5379_v12, %v1161_v54 }
 0x145   :  { %v1389_v21 = vpack.c.bf16 %v1286_v9, %v1285_v5  ;;  %v4565_v23 = vpop.f32.mrb[52].mxu0  ;;  %v1348_v62 = vmax.f32 %v1170_v53, 0.0 }
 0x146   :  { %v943_v25 = vadd.f32 %v4565_v23, %v5379_v12  ;;  %v934_v26 = vpop.f32.mrb[53].mxu0  ;;  %v1346_v1 = vmax.f32 %v1162_v59, 0.0 }
 0x147   :  { %v935_v28 = vadd.f32 %v5379_v12, %v934_v26  ;;  %v4566_v29 = vpop.f32.mrb[54].mxu0  ;;  %4703 = vmatprep.mubr.bf16.mxu1 %v1389_v21  ;;  %v5549_v9 = vpack.c.bf16 %v1348_v62, %v1347_v52 }
 0x148   :  { %v946_v31 = vadd.f32 %v4566_v29, %v5379_v12  ;;  %v937_v32 = vpop.f32.mrb[55].mxu0  ;;  %4704 = vmatmul.mubr.bf16.gmra.mrb[112].mxu1 %v1390_v17  ;;  %v1291_v44 = vmax.f32 %v943_v25, 0.0  ;;  %v5552_v16 = vpack.c.bf16 %v1346_v1, %v1345_v57  ;;  %v4625_v17 = vpop.f32.mrb[48].mxu1 }
 0x149   :  { %v938_v37 = vadd.f32 %v5379_v12, %v937_v32  ;;  %v1289_v50 = vmax.f32 %v935_v28, 0.0  ;;  %v1183_v20 = vadd.f32 %v4625_v17, %v5379_v12  ;;  %v1174_v21 = vpop.f32.mrb[49].mxu1 }
 0x14a   :  { %v1292_v46 = vmax.f32 %v946_v31, 0.0  ;;  %v1175_v25 = vadd.f32 %v5379_v12, %v1174_v21  ;;  %v4626_v26 = vpop.f32.mrb[50].mxu1 }
 0x14b   :  { %v1290_v51 = vmax.f32 %v938_v37, 0.0  ;;  %v1351_v29 = vmax.f32 %v1183_v20, 0.0  ;;  %v1186_v31 = vadd.f32 %v4626_v26, %v5379_v12  ;;  %v1177_v32 = vpop.f32.mrb[51].mxu1 }
 0x14c   :  { %v1392_v56 = vpack.c.bf16 %v1292_v46, %v1291_v44  ;;  %v1349_v37 = vmax.f32 %v1175_v25, 0.0  ;;  %v1178_v40 = vadd.f32 %v5379_v12, %v1177_v32 }
 0x14d   :  { %v1391_v60 = vpack.c.bf16 %v1290_v51, %v1289_v50  ;;  %v4569_v61 = vpop.f32.mrb[56].mxu0  ;;  %v1352_v46 = vmax.f32 %v1186_v31, 0.0 }
 0x14e   :  { %v959_v63 = vadd.f32 %v4569_v61, %v5379_v12  ;;  %v950_v0 = vpop.f32.mrb[57].mxu0  ;;  %v1350_v50 = vmax.f32 %v1178_v40, 0.0 }
 0x14f   :  { %v951_v3 = vadd.f32 %v5379_v12, %v950_v0  ;;  %v4570_v5 = vpop.f32.mrb[58].mxu0  ;;  %4707 = vmatprep.mubr.bf16.mxu1 %v1391_v60  ;;  %v5561_v53 = vpack.c.bf16 %v1352_v46, %v1351_v29 }
 0x150   :  { %v962_v11 = vadd.f32 %v4570_v5, %v5379_v12  ;;  %v953_v15 = vpop.f32.mrb[59].mxu0  ;;  %4708 = vmatmul.mubr.bf16.gmra.mrb[116].mxu1 %v1392_v56  ;;  %v1295_v23 = vmax.f32 %v959_v63, 0.0  ;;  %v5564_v57 = vpack.c.bf16 %v1350_v50, %v1349_v37  ;;  %v4629_v59 = vpop.f32.mrb[52].mxu1 }
 0x151   :  { %v954_v18 = vadd.f32 %v5379_v12, %v953_v15  ;;  %v1293_v27 = vmax.f32 %v951_v3, 0.0  ;;  %v1199_v61 = vadd.f32 %v4629_v59, %v5379_v12  ;;  %v1190_v62 = vpop.f32.mrb[53].mxu1 }
 0x152   :  { %v1296_v24 = vmax.f32 %v962_v11, 0.0  ;;  %v1191_v1 = vadd.f32 %v5379_v12, %v1190_v62  ;;  %v4630_v3 = vpop.f32.mrb[54].mxu1 }
 0x153   :  { %v1294_v28 = vmax.f32 %v954_v18, 0.0  ;;  %v1355_v15 = vmax.f32 %v1199_v61, 0.0  ;;  %v1202_v17 = vadd.f32 %v4630_v3, %v5379_v12  ;;  %v1193_v18 = vpop.f32.mrb[55].mxu1 }
 0x154   :  { %v1394_v34 = vpack.c.bf16 %v1296_v24, %v1295_v23  ;;  %v1353_v21 = vmax.f32 %v1191_v1, 0.0  ;;  %v1194_v23 = vadd.f32 %v5379_v12, %v1193_v18 }
 0x155   :  { %v1393_v43 = vpack.c.bf16 %v1294_v28, %v1293_v27  ;;  %v4573_v44 = vpop.f32.mrb[60].mxu0  ;;  %v1356_v25 = vmax.f32 %v1202_v17, 0.0 }
 0x156   :  { %v975_v47 = vadd.f32 %v4573_v44, %v5379_v12  ;;  %v966_v49 = vpop.f32.mrb[61].mxu0  ;;  %v1354_v26 = vmax.f32 %v1194_v23, 0.0 }
 0x157   :  { %v967_v51 = vadd.f32 %v5379_v12, %v966_v49  ;;  %v4574_v52 = vpop.f32.mrb[62].mxu0  ;;  %4711 = vmatprep.mubr.bf16.mxu1 %v1393_v43  ;;  %v5571_v27 = vpack.c.bf16 %v1356_v25, %v1355_v15 }
 0x158   :  { %v978_v54 = vadd.f32 %v4574_v52, %v5379_v12  ;;  %v969_v56 = vpop.f32.mrb[63].mxu0  ;;  %4712 = vmatmul.mubr.bf16.gmra.mrb[120].mxu1 %v1394_v34  ;;  %v1299_v63 = vmax.f32 %v975_v47, 0.0  ;;  %v5573_v28 = vpack.c.bf16 %v1354_v26, %v1353_v21  ;;  %v4633_v29 = vpop.f32.mrb[56].mxu1 }
 0x159   :  { %v970_v60 = vadd.f32 %v5379_v12, %v969_v56  ;;  %v1297_v5 = vmax.f32 %v967_v51, 0.0  ;;  %v1215_v31 = vadd.f32 %v4633_v29, %v5379_v12  ;;  %v1206_v32 = vpop.f32.mrb[57].mxu1 }
 0x15a   :  { %v1300_v0 = vmax.f32 %v978_v54, 0.0  ;;  %v1207_v34 = vadd.f32 %v5379_v12, %v1206_v32  ;;  %v4634_v37 = vpop.f32.mrb[58].mxu1 }
 0x15b   :  { %v1298_v11 = vmax.f32 %v970_v60, 0.0  ;;  %v1359_v40 = vmax.f32 %v1215_v31, 0.0  ;;  %v1218_v43 = vadd.f32 %v4634_v37, %v5379_v12  ;;  %v1209_v44 = vpop.f32.mrb[59].mxu1 }
 0x15c   :  { %v1396_v20 = vpack.c.bf16 %v1300_v0, %v1299_v63  ;;  %v1357_v46 = vmax.f32 %v1207_v34, 0.0  ;;  %v1210_v47 = vadd.f32 %v5379_v12, %v1209_v44 }
 0x15d   :  { %v1395_v24 = vpack.c.bf16 %v1298_v11, %v1297_v5  ;;  %v1360_v49 = vmax.f32 %v1218_v43, 0.0 }
 0x15e   :  { %v1358_v50 = vmax.f32 %v1210_v47, 0.0 }
 0x15f   :  { %4715 = vmatprep.mubr.bf16.mxu1 %v1395_v24  ;;  %v5580_v51 = vpack.c.bf16 %v1360_v49, %v1359_v40 }
 0x160   :  { %4716 = vmatmul.mubr.bf16.gmra.mrb[124].mxu1 %v1396_v20  ;;  %v4637_v52 = vpop.f32.mrb[60].mxu1 }
 0x161   :  { %4719 = vmatprep.mubr.bf16.mxu1 %v5408_v14  ;;  %v5583_v14 = vpack.c.bf16 %v1358_v50, %v1357_v46  ;;  %v1231_v54 = vadd.f32 %v4637_v52, %v5379_v12  ;;  %v1222_v56 = vpop.f32.mrb[61].mxu1 }
 0x162   :  { %v1223_v59 = vadd.f32 %v5379_v12, %v1222_v56  ;;  %v4638_v60 = vpop.f32.mrb[62].mxu1 }
 0x163   :  { %v1363_v61 = vmax.f32 %v1231_v54, 0.0  ;;  %v1234_v62 = vadd.f32 %v4638_v60, %v5379_v12  ;;  %v1225_v63 = vpop.f32.mrb[63].mxu1 }
 0x164   :  { %v1361_v0 = vmax.f32 %v1223_v59, 0.0  ;;  %v1226_v1 = vadd.f32 %v5379_v12, %v1225_v63  ;;  %v5617_v12 = vld [vmem:[%s5900_s4] ss:$0 sm:$0xff] }
 0x165   :  { %v1364_v3 = vmax.f32 %v1234_v62, 0.0 }
 0x167   :  { %v5590_v5 = vpack.c.bf16 %v1364_v3, %v1363_v61 }
 0x168   :  { %4720 = vmatmul.mubr.bf16.gmra.mrb[128].mxu1 %v5405_v10  ;;  %v1362_v10 = vmax.f32 %v1226_v1, 0.0 }
 0x169   :  { %4723 = vmatprep.mubr.bf16.mxu1 %v5420_v42 }
 0x16a   :  { %v5593_v42 = vpack.c.bf16 %v1362_v10, %v1361_v0 }
 0x170   :  { %4724 = vmatmul.mubr.bf16.gmra.mrb[132].mxu1 %v5417_v39 }
 0x171   :  { %4727 = vmatprep.mubr.bf16.mxu1 %v5435_v7 }
 0x178   :  { %4728 = vmatmul.mubr.bf16.gmra.mrb[136].mxu1 %v5432_v4 }
 0x179   :  { %4731 = vmatprep.mubr.bf16.mxu1 %v5447_v38 }
 0x180   :  { %4732 = vmatmul.mubr.bf16.gmra.mrb[140].mxu1 %v5444_v35 }
 0x181   :  { %4735 = vmatprep.mubr.bf16.mxu1 %v5462_v6 }
 0x188   :  { %4736 = vmatmul.mubr.bf16.gmra.mrb[144].mxu1 %v5459_v2 }
 0x189   :  { %4739 = vmatprep.mubr.bf16.mxu1 %v5474_v41 }
 0x190   :  { %4740 = vmatmul.mubr.bf16.gmra.mrb[148].mxu1 %v5471_v36 }
 0x191   :  { %4743 = vmatprep.mubr.bf16.mxu1 %v5489_v13 }
 0x198   :  { %4744 = vmatmul.mubr.bf16.gmra.mrb[152].mxu1 %v5486_v8 }
 0x199   :  { %4747 = vmatprep.mubr.bf16.mxu1 %v5501_v48 }
 0x1a0   :  { %4748 = vmatmul.mubr.bf16.gmra.mrb[156].mxu1 %v5498_v45 }
 0x1a1   :  { %4751 = vmatprep.mubr.bf16.mxu1 %v5516_v22 }
 0x1a8   :  { %4752 = vmatmul.mubr.bf16.gmra.mrb[160].mxu1 %v5513_v19 }
 0x1a9   :  { %4755 = vmatprep.mubr.bf16.mxu1 %v5528_v58 }
 0x1b0   :  { %4756 = vmatmul.mubr.bf16.gmra.mrb[164].mxu1 %v5525_v55 }
 0x1b1   :  { %4759 = vmatprep.mubr.bf16.mxu1 %v5540_v33 }
 0x1b8   :  { %4760 = vmatmul.mubr.bf16.gmra.mrb[168].mxu1 %v5537_v30 }
 0x1b9   :  { %4763 = vmatprep.mubr.bf16.mxu1 %v5552_v16 }
 0x1bb   :  { %v4657_v39 = vpop.f32.mrb[64].mxu1 }
 0x1bc   :  { %v1543_v4 = vadd.f32 %v4657_v39, %v5617_v12  ;;  %v1534_v7 = vpop.f32.mrb[65].mxu1 }
 0x1bd   :  { %v1535_v35 = vadd.f32 %v5617_v12, %v1534_v7  ;;  %v4658_v38 = vpop.f32.mrb[66].mxu1 }
 0x1be   :  { %v1546_v2 = vadd.f32 %v4658_v38, %v5617_v12  ;;  %v1537_v6 = vpop.f32.mrb[67].mxu1  ;;  %v2047_v41 = vmax.f32 %v1543_v4, 0.0 }
 0x1bf   :  { %v1538_v36 = vadd.f32 %v5617_v12, %v1537_v6  ;;  %v2045_v13 = vmax.f32 %v1535_v35, 0.0 }
 0x1c0   :  { %v2048_v8 = vmax.f32 %v1546_v2, 0.0  ;;  %4764 = vmatmul.mubr.bf16.gmra.mrb[172].mxu1 %v5549_v9 }
 0x1c1   :  { %v2046_v45 = vmax.f32 %v1538_v36, 0.0  ;;  %4767 = vmatprep.mubr.bf16.mxu1 %v5564_v57 }
 0x1c2   :  { %v2174_v48 = vpack.c.bf16 %v2048_v8, %v2047_v41 }
 0x1c3   :  { %v2173_v19 = vpack.c.bf16 %v2046_v45, %v2045_v13  ;;  %v4661_v22 = vpop.f32.mrb[68].mxu1 }
 0x1c4   :  { %v1559_v55 = vadd.f32 %v4661_v22, %v5617_v12  ;;  %v1550_v58 = vpop.f32.mrb[69].mxu1 }
 0x1c5   :  { %v1551_v30 = vadd.f32 %v5617_v12, %v1550_v58  ;;  %v4662_v33 = vpop.f32.mrb[70].mxu1  ;;  %4799 = vmatprep.mubr.bf16.mxu0 %v2173_v19 }
 0x1c6   :  { %v1562_v16 = vadd.f32 %v4662_v33, %v5617_v12  ;;  %v1553_v11 = vpop.f32.mrb[71].mxu1  ;;  %4800 = vmatmul.mubr.bf16.vlgmr.msra.gmra.mrb[64].mxu0 %v2174_v48  ;;  %v2051_v15 = vmax.f32 %v1559_v55, 0.0 }
 0x1c7   :  { %v1554_v9 = vadd.f32 %v5617_v12, %v1553_v11  ;;  %v2049_v57 = vmax.f32 %v1551_v30, 0.0 }
 0x1c8   :  { %v2052_v17 = vmax.f32 %v1562_v16, 0.0  ;;  %4768 = vmatmul.mubr.bf16.gmra.mrb[176].mxu1 %v5561_v53 }
 0x1c9   :  { %v2050_v18 = vmax.f32 %v1554_v9, 0.0  ;;  %4771 = vmatprep.mubr.bf16.mxu1 %v5573_v28 }
 0x1ca   :  { %v2176_v20 = vpack.c.bf16 %v2052_v17, %v2051_v15 }
 0x1cb   :  { %v2175_v21 = vpack.c.bf16 %v2050_v18, %v2049_v57  ;;  %v4665_v23 = vpop.f32.mrb[72].mxu1 }
 0x1cc   :  { %v1575_v24 = vadd.f32 %v4665_v23, %v5617_v12  ;;  %v1566_v25 = vpop.f32.mrb[73].mxu1 }
 0x1cd   :  { %v1567_v26 = vadd.f32 %v5617_v12, %v1566_v25  ;;  %v4666_v29 = vpop.f32.mrb[74].mxu1  ;;  %4803 = vmatprep.mubr.bf16.mxu0 %v2175_v21 }
 0x1ce   :  { %v1578_v31 = vadd.f32 %v4666_v29, %v5617_v12  ;;  %v1569_v32 = vpop.f32.mrb[75].mxu1  ;;  %4804 = vmatmul.mubr.bf16.gmra.mrb[68].mxu0 %v2176_v20  ;;  %v2055_v34 = vmax.f32 %v1575_v24, 0.0 }
 0x1cf   :  { %v1570_v53 = vadd.f32 %v5617_v12, %v1569_v32  ;;  %v2053_v28 = vmax.f32 %v1567_v26, 0.0 }
 0x1d0   :  { %v2056_v37 = vmax.f32 %v1578_v31, 0.0  ;;  %4772 = vmatmul.mubr.bf16.gmra.mrb[180].mxu1 %v5571_v27 }
 0x1d1   :  { %v2054_v40 = vmax.f32 %v1570_v53, 0.0  ;;  %4775 = vmatprep.mubr.bf16.mxu1 %v5583_v14 }
 0x1d2   :  { %v2178_v43 = vpack.c.bf16 %v2056_v37, %v2055_v34 }
 0x1d3   :  { %v2177_v44 = vpack.c.bf16 %v2054_v40, %v2053_v28  ;;  %v4669_v46 = vpop.f32.mrb[76].mxu1 }
 0x1d4   :  { %v1591_v47 = vadd.f32 %v4669_v46, %v5617_v12  ;;  %v1582_v49 = vpop.f32.mrb[77].mxu1 }
 0x1d5   :  { %v1583_v50 = vadd.f32 %v5617_v12, %v1582_v49  ;;  %v4670_v52 = vpop.f32.mrb[78].mxu1  ;;  %4807 = vmatprep.mubr.bf16.mxu0 %v2177_v44 }
 0x1d6   :  { %v1594_v54 = vadd.f32 %v4670_v52, %v5617_v12  ;;  %v1585_v56 = vpop.f32.mrb[79].mxu1  ;;  %4808 = vmatmul.mubr.bf16.gmra.mrb[72].mxu0 %v2178_v43  ;;  %v2059_v59 = vmax.f32 %v1591_v47, 0.0 }
 0x1d7   :  { %v1586_v27 = vadd.f32 %v5617_v12, %v1585_v56  ;;  %v2057_v14 = vmax.f32 %v1583_v50, 0.0 }
 0x1d8   :  { %v2060_v60 = vmax.f32 %v1594_v54, 0.0  ;;  %4776 = vmatmul.mubr.bf16.gmra.mrb[184].mxu1 %v5580_v51 }
 0x1d9   :  { %v2058_v61 = vmax.f32 %v1586_v27, 0.0  ;;  %4779 = vmatprep.mubr.bf16.mxu1 %v5593_v42 }
 0x1da   :  { %v2180_v62 = vpack.c.bf16 %v2060_v60, %v2059_v59 }
 0x1db   :  { %v2179_v63 = vpack.c.bf16 %v2058_v61, %v2057_v14  ;;  %v4673_v0 = vpop.f32.mrb[80].mxu1 }
 0x1dc   :  { %v1607_v1 = vadd.f32 %v4673_v0, %v5617_v12  ;;  %v1598_v3 = vpop.f32.mrb[81].mxu1 }
 0x1dd   :  { %v1599_v10 = vadd.f32 %v5617_v12, %v1598_v3  ;;  %v4674_v39 = vpop.f32.mrb[82].mxu1  ;;  %4811 = vmatprep.mubr.bf16.mxu0 %v2179_v63 }
 0x1de   :  { %v1610_v4 = vadd.f32 %v4674_v39, %v5617_v12  ;;  %v1601_v7 = vpop.f32.mrb[83].mxu1  ;;  %4812 = vmatmul.mubr.bf16.gmra.mrb[76].mxu0 %v2180_v62  ;;  %v2063_v35 = vmax.f32 %v1607_v1, 0.0 }
 0x1df   :  { %v1602_v51 = vadd.f32 %v5617_v12, %v1601_v7  ;;  %v2061_v42 = vmax.f32 %v1599_v10, 0.0 }
 0x1e0   :  { %v2064_v38 = vmax.f32 %v1610_v4, 0.0  ;;  %4780 = vmatmul.mubr.bf16.gmra.mrb[188].mxu1 %v5590_v5 }
 0x1e1   :  { %v2062_v2 = vmax.f32 %v1602_v51, 0.0 }
 0x1e2   :  { %v2182_v6 = vpack.c.bf16 %v2064_v38, %v2063_v35 }
 0x1e3   :  { %v2181_v36 = vpack.c.bf16 %v2062_v2, %v2061_v42  ;;  %v4677_v41 = vpop.f32.mrb[84].mxu1 }
 0x1e4   :  { %v1623_v8 = vadd.f32 %v4677_v41, %v5617_v12  ;;  %v1614_v13 = vpop.f32.mrb[85].mxu1 }
 0x1e5   :  { %v1615_v45 = vadd.f32 %v5617_v12, %v1614_v13  ;;  %v4678_v48 = vpop.f32.mrb[86].mxu1  ;;  %4815 = vmatprep.mubr.bf16.mxu0 %v2181_v36 }
 0x1e6   :  { %v1626_v19 = vadd.f32 %v4678_v48, %v5617_v12  ;;  %v1617_v22 = vpop.f32.mrb[87].mxu1  ;;  %4816 = vmatmul.mubr.bf16.gmra.mrb[80].mxu0 %v2182_v6  ;;  %v2067_v58 = vmax.f32 %v1623_v8, 0.0 }
 0x1e7   :  { %v1618_v55 = vadd.f32 %v5617_v12, %v1617_v22  ;;  %v2065_v30 = vmax.f32 %v1615_v45, 0.0 }
 0x1e8   :  { %v2068_v5 = vmax.f32 %v1626_v19, 0.0 }
 0x1e9   :  { %v2066_v33 = vmax.f32 %v1618_v55, 0.0 }
 0x1ea   :  { %v2184_v16 = vpack.c.bf16 %v2068_v5, %v2067_v58 }
 0x1eb   :  { %v2183_v11 = vpack.c.bf16 %v2066_v33, %v2065_v30  ;;  %v4681_v9 = vpop.f32.mrb[88].mxu1 }
 0x1ec   :  { %v1639_v15 = vadd.f32 %v4681_v9, %v5617_v12  ;;  %v1630_v17 = vpop.f32.mrb[89].mxu1 }
 0x1ed   :  { %v1631_v57 = vadd.f32 %v5617_v12, %v1630_v17  ;;  %v4682_v18 = vpop.f32.mrb[90].mxu1  ;;  %4819 = vmatprep.mubr.bf16.mxu0 %v2183_v11 }
 0x1ee   :  { %v1642_v20 = vadd.f32 %v4682_v18, %v5617_v12  ;;  %v1633_v21 = vpop.f32.mrb[91].mxu1  ;;  %4820 = vmatmul.mubr.bf16.gmra.mrb[84].mxu0 %v2184_v16  ;;  %v2071_v24 = vmax.f32 %v1639_v15, 0.0 }
 0x1ef   :  { %v1634_v23 = vadd.f32 %v5617_v12, %v1633_v21  ;;  %v2069_v26 = vmax.f32 %v1631_v57, 0.0 }
 0x1f0   :  { %v2072_v25 = vmax.f32 %v1642_v20, 0.0 }
 0x1f1   :  { %v2070_v29 = vmax.f32 %v1634_v23, 0.0 }
 0x1f2   :  { %v2186_v31 = vpack.c.bf16 %v2072_v25, %v2071_v24 }
 0x1f3   :  { %v2185_v32 = vpack.c.bf16 %v2070_v29, %v2069_v26  ;;  %v4685_v53 = vpop.f32.mrb[92].mxu1 }
 0x1f4   :  { %v1655_v34 = vadd.f32 %v4685_v53, %v5617_v12  ;;  %v1646_v37 = vpop.f32.mrb[93].mxu1 }
 0x1f5   :  { %v1647_v28 = vadd.f32 %v5617_v12, %v1646_v37  ;;  %v4686_v40 = vpop.f32.mrb[94].mxu1  ;;  %4823 = vmatprep.mubr.bf16.mxu0 %v2185_v32 }
 0x1f6   :  { %v1658_v43 = vadd.f32 %v4686_v40, %v5617_v12  ;;  %v1649_v44 = vpop.f32.mrb[95].mxu1  ;;  %4824 = vmatmul.mubr.bf16.gmra.mrb[88].mxu0 %v2186_v31  ;;  %v2075_v47 = vmax.f32 %v1655_v34, 0.0 }
 0x1f7   :  { %v1650_v46 = vadd.f32 %v5617_v12, %v1649_v44  ;;  %v2073_v50 = vmax.f32 %v1647_v28, 0.0 }
 0x1f8   :  { %v2076_v49 = vmax.f32 %v1658_v43, 0.0 }
 0x1f9   :  { %v2074_v52 = vmax.f32 %v1650_v46, 0.0 }
 0x1fa   :  { %v2188_v54 = vpack.c.bf16 %v2076_v49, %v2075_v47 }
 0x1fb   :  { %v2187_v56 = vpack.c.bf16 %v2074_v52, %v2073_v50  ;;  %v4689_v27 = vpop.f32.mrb[96].mxu1 }
 0x1fc   :  { %v1671_v59 = vadd.f32 %v4689_v27, %v5617_v12  ;;  %v1662_v60 = vpop.f32.mrb[97].mxu1 }
 0x1fd   :  { %v1663_v14 = vadd.f32 %v5617_v12, %v1662_v60  ;;  %v4690_v61 = vpop.f32.mrb[98].mxu1  ;;  %4827 = vmatprep.mubr.bf16.mxu0 %v2187_v56 }
 0x1fe   :  { %v1674_v62 = vadd.f32 %v4690_v61, %v5617_v12  ;;  %v1665_v63 = vpop.f32.mrb[99].mxu1  ;;  %4828 = vmatmul.mubr.bf16.gmra.mrb[92].mxu0 %v2188_v54  ;;  %v2079_v1 = vmax.f32 %v1671_v59, 0.0 }
 0x1ff   :  { %v1666_v0 = vadd.f32 %v5617_v12, %v1665_v63  ;;  %v2077_v10 = vmax.f32 %v1663_v14, 0.0 }
 0x200   :  { %v2080_v3 = vmax.f32 %v1674_v62, 0.0 }
 0x201   :  { %v2078_v39 = vmax.f32 %v1666_v0, 0.0 }
 0x202   :  { %v2190_v4 = vpack.c.bf16 %v2080_v3, %v2079_v1 }
 0x203   :  { %v2189_v7 = vpack.c.bf16 %v2078_v39, %v2077_v10  ;;  %v4693_v51 = vpop.f32.mrb[100].mxu1 }
 0x204   :  { %v1687_v35 = vadd.f32 %v4693_v51, %v5617_v12  ;;  %v1678_v38 = vpop.f32.mrb[101].mxu1 }
 0x205   :  { %v1679_v42 = vadd.f32 %v5617_v12, %v1678_v38  ;;  %v4694_v2 = vpop.f32.mrb[102].mxu1  ;;  %4831 = vmatprep.mubr.bf16.mxu0 %v2189_v7 }
 0x206   :  { %v1690_v6 = vadd.f32 %v4694_v2, %v5617_v12  ;;  %v1681_v36 = vpop.f32.mrb[103].mxu1  ;;  %4832 = vmatmul.mubr.bf16.gmra.mrb[96].mxu0 %v2190_v4  ;;  %v2083_v8 = vmax.f32 %v1687_v35, 0.0 }
 0x207   :  { %v1682_v41 = vadd.f32 %v5617_v12, %v1681_v36  ;;  %v2081_v45 = vmax.f32 %v1679_v42, 0.0 }
 0x208   :  { %v2084_v13 = vmax.f32 %v1690_v6, 0.0 }
 0x209   :  { %v2082_v48 = vmax.f32 %v1682_v41, 0.0 }
 0x20a   :  { %v2192_v19 = vpack.c.bf16 %v2084_v13, %v2083_v8 }
 0x20b   :  { %v2191_v22 = vpack.c.bf16 %v2082_v48, %v2081_v45  ;;  %v4697_v55 = vpop.f32.mrb[104].mxu1 }
 0x20c   :  { %v1703_v58 = vadd.f32 %v4697_v55, %v5617_v12  ;;  %v1694_v5 = vpop.f32.mrb[105].mxu1 }
 0x20d   :  { %v1695_v30 = vadd.f32 %v5617_v12, %v1694_v5  ;;  %v4698_v33 = vpop.f32.mrb[106].mxu1  ;;  %4835 = vmatprep.mubr.bf16.mxu0 %v2191_v22 }
 0x20e   :  { %v1706_v16 = vadd.f32 %v4698_v33, %v5617_v12  ;;  %v1697_v11 = vpop.f32.mrb[107].mxu1  ;;  %4836 = vmatmul.mubr.bf16.gmra.mrb[100].mxu0 %v2192_v19  ;;  %v2087_v15 = vmax.f32 %v1703_v58, 0.0 }
 0x20f   :  { %v1698_v9 = vadd.f32 %v5617_v12, %v1697_v11  ;;  %v2085_v57 = vmax.f32 %v1695_v30, 0.0 }
 0x210   :  { %v2088_v17 = vmax.f32 %v1706_v16, 0.0 }
 0x211   :  { %v2086_v18 = vmax.f32 %v1698_v9, 0.0 }
 0x212   :  { %v2194_v20 = vpack.c.bf16 %v2088_v17, %v2087_v15 }
 0x213   :  { %v2193_v21 = vpack.c.bf16 %v2086_v18, %v2085_v57  ;;  %v4701_v23 = vpop.f32.mrb[108].mxu1 }
 0x214   :  { %v1719_v24 = vadd.f32 %v4701_v23, %v5617_v12  ;;  %v1710_v25 = vpop.f32.mrb[109].mxu1 }
 0x215   :  { %v1711_v26 = vadd.f32 %v5617_v12, %v1710_v25  ;;  %v4702_v29 = vpop.f32.mrb[110].mxu1  ;;  %4839 = vmatprep.mubr.bf16.mxu0 %v2193_v21 }
 0x216   :  { %v1722_v31 = vadd.f32 %v4702_v29, %v5617_v12  ;;  %v1713_v32 = vpop.f32.mrb[111].mxu1  ;;  %4840 = vmatmul.mubr.bf16.gmra.mrb[104].mxu0 %v2194_v20  ;;  %v2091_v34 = vmax.f32 %v1719_v24, 0.0 }
 0x217   :  { %v1714_v53 = vadd.f32 %v5617_v12, %v1713_v32  ;;  %v2089_v28 = vmax.f32 %v1711_v26, 0.0 }
 0x218   :  { %v2092_v37 = vmax.f32 %v1722_v31, 0.0 }
 0x219   :  { %v2090_v40 = vmax.f32 %v1714_v53, 0.0 }
 0x21a   :  { %v2196_v43 = vpack.c.bf16 %v2092_v37, %v2091_v34 }
 0x21b   :  { %v2195_v44 = vpack.c.bf16 %v2090_v40, %v2089_v28  ;;  %v4705_v46 = vpop.f32.mrb[112].mxu1 }
 0x21c   :  { %v1735_v47 = vadd.f32 %v4705_v46, %v5617_v12  ;;  %v1726_v49 = vpop.f32.mrb[113].mxu1 }
 0x21d   :  { %v1727_v50 = vadd.f32 %v5617_v12, %v1726_v49  ;;  %v4706_v52 = vpop.f32.mrb[114].mxu1  ;;  %4843 = vmatprep.mubr.bf16.mxu0 %v2195_v44 }
 0x21e   :  { %v1738_v54 = vadd.f32 %v4706_v52, %v5617_v12  ;;  %v1729_v56 = vpop.f32.mrb[115].mxu1  ;;  %4844 = vmatmul.mubr.bf16.gmra.mrb[108].mxu0 %v2196_v43  ;;  %v2095_v59 = vmax.f32 %v1735_v47, 0.0 }
 0x21f   :  { %v1730_v27 = vadd.f32 %v5617_v12, %v1729_v56  ;;  %v2093_v14 = vmax.f32 %v1727_v50, 0.0 }
 0x220   :  { %v2096_v60 = vmax.f32 %v1738_v54, 0.0 }
 0x221   :  { %v2094_v61 = vmax.f32 %v1730_v27, 0.0 }
 0x222   :  { %v2198_v62 = vpack.c.bf16 %v2096_v60, %v2095_v59 }
 0x223   :  { %v2197_v63 = vpack.c.bf16 %v2094_v61, %v2093_v14  ;;  %v4709_v0 = vpop.f32.mrb[116].mxu1 }
 0x224   :  { %v1751_v1 = vadd.f32 %v4709_v0, %v5617_v12  ;;  %v1742_v3 = vpop.f32.mrb[117].mxu1 }
 0x225   :  { %v1743_v10 = vadd.f32 %v5617_v12, %v1742_v3  ;;  %v4710_v39 = vpop.f32.mrb[118].mxu1  ;;  %4847 = vmatprep.mubr.bf16.mxu0 %v2197_v63 }
 0x226   :  { %v1754_v4 = vadd.f32 %v4710_v39, %v5617_v12  ;;  %v1745_v7 = vpop.f32.mrb[119].mxu1  ;;  %4848 = vmatmul.mubr.bf16.gmra.mrb[112].mxu0 %v2198_v62  ;;  %v2099_v35 = vmax.f32 %v1751_v1, 0.0 }
 0x227   :  { %v1746_v51 = vadd.f32 %v5617_v12, %v1745_v7  ;;  %v2097_v42 = vmax.f32 %v1743_v10, 0.0 }
 0x228   :  { %v2100_v38 = vmax.f32 %v1754_v4, 0.0 }
 0x229   :  { %v2098_v2 = vmax.f32 %v1746_v51, 0.0 }
 0x22a   :  { %v2200_v6 = vpack.c.bf16 %v2100_v38, %v2099_v35 }
 0x22b   :  { %v2199_v36 = vpack.c.bf16 %v2098_v2, %v2097_v42  ;;  %v4713_v41 = vpop.f32.mrb[120].mxu1 }
 0x22c   :  { %v1767_v8 = vadd.f32 %v4713_v41, %v5617_v12  ;;  %v1758_v13 = vpop.f32.mrb[121].mxu1 }
 0x22d   :  { %v1759_v45 = vadd.f32 %v5617_v12, %v1758_v13  ;;  %v4714_v48 = vpop.f32.mrb[122].mxu1  ;;  %4851 = vmatprep.mubr.bf16.mxu0 %v2199_v36 }
 0x22e   :  { %v1770_v19 = vadd.f32 %v4714_v48, %v5617_v12  ;;  %v1761_v22 = vpop.f32.mrb[123].mxu1  ;;  %4852 = vmatmul.mubr.bf16.gmra.mrb[116].mxu0 %v2200_v6  ;;  %v2103_v58 = vmax.f32 %v1767_v8, 0.0 }
 0x22f   :  { %v1762_v55 = vadd.f32 %v5617_v12, %v1761_v22  ;;  %v2101_v30 = vmax.f32 %v1759_v45, 0.0 }
 0x230   :  { %v2104_v5 = vmax.f32 %v1770_v19, 0.0 }
 0x231   :  { %v2102_v33 = vmax.f32 %v1762_v55, 0.0 }
 0x232   :  { %v2202_v16 = vpack.c.bf16 %v2104_v5, %v2103_v58 }
 0x233   :  { %v2201_v11 = vpack.c.bf16 %v2102_v33, %v2101_v30  ;;  %v4717_v9 = vpop.f32.mrb[124].mxu1 }
 0x234   :  { %v1783_v15 = vadd.f32 %v4717_v9, %v5617_v12  ;;  %v1774_v17 = vpop.f32.mrb[125].mxu1 }
 0x235   :  { %v1775_v57 = vadd.f32 %v5617_v12, %v1774_v17  ;;  %v4718_v18 = vpop.f32.mrb[126].mxu1  ;;  %4855 = vmatprep.mubr.bf16.mxu0 %v2201_v11 }
 0x236   :  { %v1786_v20 = vadd.f32 %v4718_v18, %v5617_v12  ;;  %v1777_v21 = vpop.f32.mrb[127].mxu1  ;;  %4856 = vmatmul.mubr.bf16.gmra.mrb[120].mxu0 %v2202_v16  ;;  %v2107_v24 = vmax.f32 %v1783_v15, 0.0 }
 0x237   :  { %v1778_v23 = vadd.f32 %v5617_v12, %v1777_v21  ;;  %v2105_v26 = vmax.f32 %v1775_v57, 0.0 }
 0x238   :  { %v2108_v25 = vmax.f32 %v1786_v20, 0.0 }
 0x239   :  { %v2106_v29 = vmax.f32 %v1778_v23, 0.0 }
 0x23a   :  { %v2204_v31 = vpack.c.bf16 %v2108_v25, %v2107_v24 }
 0x23b   :  { %v2203_v32 = vpack.c.bf16 %v2106_v29, %v2105_v26  ;;  %v4721_v53 = vpop.f32.mrb[128].mxu1 }
 0x23c   :  { %v1799_v34 = vadd.f32 %v4721_v53, %v5617_v12  ;;  %v1790_v37 = vpop.f32.mrb[129].mxu1 }
 0x23d   :  { %v1791_v28 = vadd.f32 %v5617_v12, %v1790_v37  ;;  %v4722_v40 = vpop.f32.mrb[130].mxu1  ;;  %4859 = vmatprep.mubr.bf16.mxu0 %v2203_v32 }
 0x23e   :  { %v1802_v43 = vadd.f32 %v4722_v40, %v5617_v12  ;;  %v1793_v44 = vpop.f32.mrb[131].mxu1  ;;  %4860 = vmatmul.mubr.bf16.gmra.mrb[124].mxu0 %v2204_v31  ;;  %v2111_v47 = vmax.f32 %v1799_v34, 0.0 }
 0x23f   :  { %v1794_v46 = vadd.f32 %v5617_v12, %v1793_v44  ;;  %v2109_v50 = vmax.f32 %v1791_v28, 0.0 }
 0x240   :  { %v2112_v49 = vmax.f32 %v1802_v43, 0.0 }
 0x241   :  { %v2110_v52 = vmax.f32 %v1794_v46, 0.0 }
 0x242   :  { %v2206_v54 = vpack.c.bf16 %v2112_v49, %v2111_v47 }
 0x243   :  { %v2205_v56 = vpack.c.bf16 %v2110_v52, %v2109_v50  ;;  %v4725_v27 = vpop.f32.mrb[132].mxu1 }
 0x244   :  { %v1815_v59 = vadd.f32 %v4725_v27, %v5617_v12  ;;  %v1806_v60 = vpop.f32.mrb[133].mxu1 }
 0x245   :  { %v1807_v14 = vadd.f32 %v5617_v12, %v1806_v60  ;;  %v4726_v61 = vpop.f32.mrb[134].mxu1  ;;  %4863 = vmatprep.mubr.bf16.mxu0 %v2205_v56 }
 0x246   :  { %v1818_v62 = vadd.f32 %v4726_v61, %v5617_v12  ;;  %v1809_v63 = vpop.f32.mrb[135].mxu1  ;;  %4864 = vmatmul.mubr.bf16.gmra.mrb[128].mxu0 %v2206_v54  ;;  %v2115_v1 = vmax.f32 %v1815_v59, 0.0 }
 0x247   :  { %v1810_v0 = vadd.f32 %v5617_v12, %v1809_v63  ;;  %v2113_v10 = vmax.f32 %v1807_v14, 0.0 }
 0x248   :  { %v2116_v3 = vmax.f32 %v1818_v62, 0.0 }
 0x249   :  { %v2114_v39 = vmax.f32 %v1810_v0, 0.0 }
 0x24a   :  { %v2208_v4 = vpack.c.bf16 %v2116_v3, %v2115_v1 }
 0x24b   :  { %v2207_v7 = vpack.c.bf16 %v2114_v39, %v2113_v10  ;;  %v4729_v51 = vpop.f32.mrb[136].mxu1 }
 0x24c   :  { %v1831_v35 = vadd.f32 %v4729_v51, %v5617_v12  ;;  %v1822_v38 = vpop.f32.mrb[137].mxu1 }
 0x24d   :  { %v1823_v42 = vadd.f32 %v5617_v12, %v1822_v38  ;;  %v4730_v2 = vpop.f32.mrb[138].mxu1  ;;  %4867 = vmatprep.mubr.bf16.mxu0 %v2207_v7 }
 0x24e   :  { %v1834_v6 = vadd.f32 %v4730_v2, %v5617_v12  ;;  %v1825_v36 = vpop.f32.mrb[139].mxu1  ;;  %4868 = vmatmul.mubr.bf16.gmra.mrb[132].mxu0 %v2208_v4  ;;  %v2119_v8 = vmax.f32 %v1831_v35, 0.0 }
 0x24f   :  { %v1826_v41 = vadd.f32 %v5617_v12, %v1825_v36  ;;  %v2117_v45 = vmax.f32 %v1823_v42, 0.0 }
 0x250   :  { %v2120_v13 = vmax.f32 %v1834_v6, 0.0 }
 0x251   :  { %v2118_v48 = vmax.f32 %v1826_v41, 0.0 }
 0x252   :  { %v2210_v19 = vpack.c.bf16 %v2120_v13, %v2119_v8 }
 0x253   :  { %v2209_v22 = vpack.c.bf16 %v2118_v48, %v2117_v45  ;;  %v4733_v55 = vpop.f32.mrb[140].mxu1 }
 0x254   :  { %v1847_v58 = vadd.f32 %v4733_v55, %v5617_v12  ;;  %v1838_v5 = vpop.f32.mrb[141].mxu1 }
 0x255   :  { %v1839_v30 = vadd.f32 %v5617_v12, %v1838_v5  ;;  %v4734_v33 = vpop.f32.mrb[142].mxu1  ;;  %4871 = vmatprep.mubr.bf16.mxu0 %v2209_v22 }
 0x256   :  { %v1850_v16 = vadd.f32 %v4734_v33, %v5617_v12  ;;  %v1841_v11 = vpop.f32.mrb[143].mxu1  ;;  %4872 = vmatmul.mubr.bf16.gmra.mrb[136].mxu0 %v2210_v19  ;;  %v2123_v15 = vmax.f32 %v1847_v58, 0.0 }
 0x257   :  { %v1842_v9 = vadd.f32 %v5617_v12, %v1841_v11  ;;  %v2121_v57 = vmax.f32 %v1839_v30, 0.0 }
 0x258   :  { %v2124_v17 = vmax.f32 %v1850_v16, 0.0 }
 0x259   :  { %v2122_v18 = vmax.f32 %v1842_v9, 0.0 }
 0x25a   :  { %v2212_v20 = vpack.c.bf16 %v2124_v17, %v2123_v15 }
 0x25b   :  { %v2211_v21 = vpack.c.bf16 %v2122_v18, %v2121_v57  ;;  %v4737_v23 = vpop.f32.mrb[144].mxu1 }
 0x25c   :  { %v1863_v24 = vadd.f32 %v4737_v23, %v5617_v12  ;;  %v1854_v25 = vpop.f32.mrb[145].mxu1 }
 0x25d   :  { %v1855_v26 = vadd.f32 %v5617_v12, %v1854_v25  ;;  %v4738_v29 = vpop.f32.mrb[146].mxu1  ;;  %4875 = vmatprep.mubr.bf16.mxu0 %v2211_v21 }
 0x25e   :  { %v1866_v31 = vadd.f32 %v4738_v29, %v5617_v12  ;;  %v1857_v32 = vpop.f32.mrb[147].mxu1  ;;  %4876 = vmatmul.mubr.bf16.gmra.mrb[140].mxu0 %v2212_v20  ;;  %v2127_v34 = vmax.f32 %v1863_v24, 0.0 }
 0x25f   :  { %v1858_v53 = vadd.f32 %v5617_v12, %v1857_v32  ;;  %v2125_v28 = vmax.f32 %v1855_v26, 0.0 }
 0x260   :  { %v2128_v37 = vmax.f32 %v1866_v31, 0.0 }
 0x261   :  { %v2126_v40 = vmax.f32 %v1858_v53, 0.0 }
 0x262   :  { %v2214_v43 = vpack.c.bf16 %v2128_v37, %v2127_v34 }
 0x263   :  { %v2213_v44 = vpack.c.bf16 %v2126_v40, %v2125_v28  ;;  %v4741_v46 = vpop.f32.mrb[148].mxu1 }
 0x264   :  { %v1879_v47 = vadd.f32 %v4741_v46, %v5617_v12  ;;  %v1870_v49 = vpop.f32.mrb[149].mxu1 }
 0x265   :  { %v1871_v50 = vadd.f32 %v5617_v12, %v1870_v49  ;;  %v4742_v52 = vpop.f32.mrb[150].mxu1  ;;  %4879 = vmatprep.mubr.bf16.mxu0 %v2213_v44 }
 0x266   :  { %v1882_v54 = vadd.f32 %v4742_v52, %v5617_v12  ;;  %v1873_v56 = vpop.f32.mrb[151].mxu1  ;;  %4880 = vmatmul.mubr.bf16.gmra.mrb[144].mxu0 %v2214_v43  ;;  %v2131_v59 = vmax.f32 %v1879_v47, 0.0 }
 0x267   :  { %v1874_v27 = vadd.f32 %v5617_v12, %v1873_v56  ;;  %v2129_v14 = vmax.f32 %v1871_v50, 0.0 }
 0x268   :  { %v2132_v60 = vmax.f32 %v1882_v54, 0.0 }
 0x269   :  { %v2130_v61 = vmax.f32 %v1874_v27, 0.0 }
 0x26a   :  { %v2216_v62 = vpack.c.bf16 %v2132_v60, %v2131_v59 }
 0x26b   :  { %v2215_v63 = vpack.c.bf16 %v2130_v61, %v2129_v14  ;;  %v4745_v0 = vpop.f32.mrb[152].mxu1 }
 0x26c   :  { %v1895_v1 = vadd.f32 %v4745_v0, %v5617_v12  ;;  %v1886_v3 = vpop.f32.mrb[153].mxu1 }
 0x26d   :  { %v1887_v10 = vadd.f32 %v5617_v12, %v1886_v3  ;;  %v4746_v39 = vpop.f32.mrb[154].mxu1  ;;  %4883 = vmatprep.mubr.bf16.mxu0 %v2215_v63 }
 0x26e   :  { %v1898_v4 = vadd.f32 %v4746_v39, %v5617_v12  ;;  %v1889_v7 = vpop.f32.mrb[155].mxu1  ;;  %4884 = vmatmul.mubr.bf16.gmra.mrb[148].mxu0 %v2216_v62  ;;  %v2135_v35 = vmax.f32 %v1895_v1, 0.0 }
 0x26f   :  { %v1890_v51 = vadd.f32 %v5617_v12, %v1889_v7  ;;  %v2133_v42 = vmax.f32 %v1887_v10, 0.0 }
 0x270   :  { %v2136_v38 = vmax.f32 %v1898_v4, 0.0 }
 0x271   :  { %v2134_v2 = vmax.f32 %v1890_v51, 0.0 }
 0x272   :  { %v2218_v6 = vpack.c.bf16 %v2136_v38, %v2135_v35 }
 0x273   :  { %v2217_v36 = vpack.c.bf16 %v2134_v2, %v2133_v42  ;;  %v4749_v41 = vpop.f32.mrb[156].mxu1 }
 0x274   :  { %v1911_v8 = vadd.f32 %v4749_v41, %v5617_v12  ;;  %v1902_v13 = vpop.f32.mrb[157].mxu1 }
 0x275   :  { %v1903_v45 = vadd.f32 %v5617_v12, %v1902_v13  ;;  %v4750_v48 = vpop.f32.mrb[158].mxu1  ;;  %4887 = vmatprep.mubr.bf16.mxu0 %v2217_v36 }
 0x276   :  { %v1914_v19 = vadd.f32 %v4750_v48, %v5617_v12  ;;  %v1905_v22 = vpop.f32.mrb[159].mxu1  ;;  %4888 = vmatmul.mubr.bf16.gmra.mrb[152].mxu0 %v2218_v6  ;;  %v2139_v58 = vmax.f32 %v1911_v8, 0.0 }
 0x277   :  { %v1906_v55 = vadd.f32 %v5617_v12, %v1905_v22  ;;  %v2137_v30 = vmax.f32 %v1903_v45, 0.0  ;;  %v5743_v22 = vld [vmem:[%s5902_s6] ss:$0 sm:$0xff] }
 0x278   :  { %v2140_v5 = vmax.f32 %v1914_v19, 0.0 }
 0x279   :  { %v2138_v33 = vmax.f32 %v1906_v55, 0.0 }
 0x27a   :  { %v2220_v16 = vpack.c.bf16 %v2140_v5, %v2139_v58 }
 0x27b   :  { %v2219_v11 = vpack.c.bf16 %v2138_v33, %v2137_v30  ;;  %v4753_v9 = vpop.f32.mrb[160].mxu1 }
 0x27c   :  { %v1927_v15 = vadd.f32 %v4753_v9, %v5617_v12  ;;  %v1918_v17 = vpop.f32.mrb[161].mxu1 }
 0x27d   :  { %v1919_v57 = vadd.f32 %v5617_v12, %v1918_v17  ;;  %v4754_v18 = vpop.f32.mrb[162].mxu1  ;;  %4891 = vmatprep.mubr.bf16.mxu0 %v2219_v11 }
 0x27e   :  { %v1930_v20 = vadd.f32 %v4754_v18, %v5617_v12  ;;  %v1921_v21 = vpop.f32.mrb[163].mxu1  ;;  %4892 = vmatmul.mubr.bf16.gmra.mrb[156].mxu0 %v2220_v16  ;;  %v2143_v24 = vmax.f32 %v1927_v15, 0.0 }
 0x27f   :  { %v1922_v23 = vadd.f32 %v5617_v12, %v1921_v21  ;;  %v2141_v26 = vmax.f32 %v1919_v57, 0.0 }
 0x280   :  { %v2144_v25 = vmax.f32 %v1930_v20, 0.0 }
 0x281   :  { %v2142_v29 = vmax.f32 %v1922_v23, 0.0 }
 0x282   :  { %v2222_v31 = vpack.c.bf16 %v2144_v25, %v2143_v24 }
 0x283   :  { %v2221_v32 = vpack.c.bf16 %v2142_v29, %v2141_v26  ;;  %v4757_v53 = vpop.f32.mrb[164].mxu1 }
 0x284   :  { %v1943_v34 = vadd.f32 %v4757_v53, %v5617_v12  ;;  %v1934_v37 = vpop.f32.mrb[165].mxu1 }
 0x285   :  { %v1935_v28 = vadd.f32 %v5617_v12, %v1934_v37  ;;  %v4758_v40 = vpop.f32.mrb[166].mxu1  ;;  %4895 = vmatprep.mubr.bf16.mxu0 %v2221_v32 }
 0x286   :  { %v1946_v43 = vadd.f32 %v4758_v40, %v5617_v12  ;;  %v1937_v44 = vpop.f32.mrb[167].mxu1  ;;  %4896 = vmatmul.mubr.bf16.gmra.mrb[160].mxu0 %v2222_v31  ;;  %v2147_v47 = vmax.f32 %v1943_v34, 0.0 }
 0x287   :  { %v1938_v46 = vadd.f32 %v5617_v12, %v1937_v44  ;;  %v2145_v50 = vmax.f32 %v1935_v28, 0.0 }
 0x288   :  { %v2148_v49 = vmax.f32 %v1946_v43, 0.0 }
 0x289   :  { %v2146_v52 = vmax.f32 %v1938_v46, 0.0 }
 0x28a   :  { %v2224_v54 = vpack.c.bf16 %v2148_v49, %v2147_v47 }
 0x28b   :  { %v2223_v56 = vpack.c.bf16 %v2146_v52, %v2145_v50  ;;  %v4761_v27 = vpop.f32.mrb[168].mxu1 }
 0x28c   :  { %v1959_v59 = vadd.f32 %v4761_v27, %v5617_v12  ;;  %v1950_v60 = vpop.f32.mrb[169].mxu1 }
 0x28d   :  { %v1951_v14 = vadd.f32 %v5617_v12, %v1950_v60  ;;  %v4762_v61 = vpop.f32.mrb[170].mxu1  ;;  %4899 = vmatprep.mubr.bf16.mxu0 %v2223_v56 }
 0x28e   :  { %v1962_v62 = vadd.f32 %v4762_v61, %v5617_v12  ;;  %v1953_v63 = vpop.f32.mrb[171].mxu1  ;;  %4900 = vmatmul.mubr.bf16.gmra.mrb[164].mxu0 %v2224_v54  ;;  %v2151_v1 = vmax.f32 %v1959_v59, 0.0 }
 0x28f   :  { %v1954_v0 = vadd.f32 %v5617_v12, %v1953_v63  ;;  %v2149_v10 = vmax.f32 %v1951_v14, 0.0 }
 0x290   :  { %v2152_v3 = vmax.f32 %v1962_v62, 0.0 }
 0x291   :  { %v2150_v39 = vmax.f32 %v1954_v0, 0.0 }
 0x292   :  { %v2226_v4 = vpack.c.bf16 %v2152_v3, %v2151_v1 }
 0x293   :  { %v2225_v7 = vpack.c.bf16 %v2150_v39, %v2149_v10  ;;  %v4765_v51 = vpop.f32.mrb[172].mxu1 }
 0x294   :  { %v1975_v35 = vadd.f32 %v4765_v51, %v5617_v12  ;;  %v1966_v38 = vpop.f32.mrb[173].mxu1 }
 0x295   :  { %v1967_v42 = vadd.f32 %v5617_v12, %v1966_v38  ;;  %v4766_v2 = vpop.f32.mrb[174].mxu1  ;;  %4903 = vmatprep.mubr.bf16.mxu0 %v2225_v7 }
 0x296   :  { %v1978_v6 = vadd.f32 %v4766_v2, %v5617_v12  ;;  %v1969_v36 = vpop.f32.mrb[175].mxu1  ;;  %4904 = vmatmul.mubr.bf16.gmra.mrb[168].mxu0 %v2226_v4  ;;  %v2155_v8 = vmax.f32 %v1975_v35, 0.0 }
 0x297   :  { %v1970_v41 = vadd.f32 %v5617_v12, %v1969_v36  ;;  %v2153_v45 = vmax.f32 %v1967_v42, 0.0 }
 0x298   :  { %v2156_v13 = vmax.f32 %v1978_v6, 0.0  ;;  %v5016_v6 = vld [vmem:[%s5900_s4] ss:$0 sm:$0xff]  ;;  %s5041_s4 = smov [#allocation2]  }
 0x299   :  { %v2154_v48 = vmax.f32 %v1970_v41, 0.0  ;;  %v4801_v19 = vpop.f32.mrb[64].mxu0  ;;  %s3498_s20 = sshll.u32 %s5041_s4, 4  ;;  %s3499_s20 = int_to_ptr.vmem [resolvable:$true] %s3498_s20 }
 0x29a   :  { %v2228_v55 = vpack.c.bf16 %v2156_v13, %v2155_v8  ;;  %v2342_v58 = vpop.f32.mrb[65].mxu0  ;;  %v2351_v16 = vadd.f32 %v4801_v19, %v5743_v22  ;;  %s5017_s21 = scalar_lea.vmem %s3499_s20, 8192  ;;  %p5022_p1 = scmp.lt.s32.totalorder %s3499_s20, %s3499_s20 }
 0x29b   :  { %v2227_v5 = vpack.c.bf16 %v2154_v48, %v2153_v45  ;;  %v4769_v30 = vpop.f32.mrb[176].mxu1  ;;  %v4802_v33 = vpop.f32.mrb[66].mxu0  ;;  %v2343_v57 = vadd.f32 %v5743_v22, %v2342_v58  ;;  %p5018_p0 = scmp.ne.s32.totalorder %s3499_s20, %s5017_s21  ;;  %p5023_p2 = scmp.lt.s32.totalorder %s5017_s21, %s5017_s21 }
 0x29c   :  { %v1991_v11 = vadd.f32 %v4769_v30, %v5617_v12  ;;  %v2354_v9 = vadd.f32 %v4802_v33, %v5743_v22  ;;  %v1982_v15 = vpop.f32.mrb[177].mxu1  ;;  %v2345_v17 = vpop.f32.mrb[67].mxu0 }
 0x29d   :  { %v1983_v18 = vadd.f32 %v5617_v12, %v1982_v15  ;;  %v2346_v20 = vadd.f32 %v5743_v22, %v2345_v17  ;;  %v4770_v21 = vpop.f32.mrb[178].mxu1  ;;  %4907 = vmatprep.mubr.bf16.mxu0 %v2227_v5  ;;  %p5024_p3 = por %p5023_p2, %p5022_p1 }
 0x29e   :  { %v3922_v23 = vpack.c.bf16 %v2354_v9, %v2351_v16  ;;  %v1994_v24 = vadd.f32 %v4770_v21, %v5617_v12  ;;  %v1985_v25 = vpop.f32.mrb[179].mxu1  ;;  %4908 = vmatmul.mubr.bf16.gmra.mrb[172].mxu0 %v2228_v55  ;;  %v2159_v31 = vmax.f32 %v1991_v11, 0.0 }
 0x29f   :  { %v3917_v26 = vpack.c.bf16 %v2346_v20, %v2343_v57  ;;  %v1986_v29 = vadd.f32 %v5617_v12, %v1985_v25  ;;  %v2157_v53 = vmax.f32 %v1983_v18, 0.0  ;;  %p5025_p4 = pnand %p5024_p3, %p5018_p0 }
 0x2a0   :  { %4234 = vst [vmem:[#allocation2 + $0x8] sm:$0xff] %v3922_v23   ;;  %v2160_v32 = vmax.f32 %v1994_v24, 0.0 }
 0x2a1   :  { %3918 = vst [vmem:[#allocation2] sm:$0xff] %v3917_v26   ;;  %v2158_v34 = vmax.f32 %v1986_v29, 0.0  ;;  %v4805_v37 = vpop.f32.mrb[68].mxu0 }
 0x2a2   :  { %v2230_v28 = vpack.c.bf16 %v2160_v32, %v2159_v31  ;;  %v2358_v40 = vpop.f32.mrb[69].mxu0  ;;  %v2367_v47 = vadd.f32 %v4805_v37, %v5743_v22 }
 0x2a3   :  { %v2229_v43 = vpack.c.bf16 %v2158_v34, %v2157_v53  ;;  %v4773_v44 = vpop.f32.mrb[180].mxu1  ;;  %v4806_v46 = vpop.f32.mrb[70].mxu0  ;;  %v2359_v56 = vadd.f32 %v5743_v22, %v2358_v40 }
 0x2a4   :  { %v2007_v49 = vadd.f32 %v4773_v44, %v5617_v12  ;;  %v2370_v50 = vadd.f32 %v4806_v46, %v5743_v22  ;;  %v1998_v52 = vpop.f32.mrb[181].mxu1  ;;  %v2361_v54 = vpop.f32.mrb[71].mxu0 }
 0x2a5   :  { %v1999_v27 = vadd.f32 %v5617_v12, %v1998_v52  ;;  %v2362_v59 = vadd.f32 %v5743_v22, %v2361_v54  ;;  %v4774_v60 = vpop.f32.mrb[182].mxu1  ;;  %4911 = vmatprep.mubr.bf16.mxu0 %v2229_v43 }
 0x2a6   :  { %v3932_v14 = vpack.c.bf16 %v2370_v50, %v2367_v47  ;;  %v2010_v61 = vadd.f32 %v4774_v60, %v5617_v12  ;;  %v2001_v62 = vpop.f32.mrb[183].mxu1  ;;  %4912 = vmatmul.mubr.bf16.gmra.mrb[176].mxu0 %v2230_v28  ;;  %v2163_v1 = vmax.f32 %v2007_v49, 0.0 }
 0x2a7   :  { %v3927_v63 = vpack.c.bf16 %v2362_v59, %v2359_v56  ;;  %v2002_v0 = vadd.f32 %v5617_v12, %v2001_v62  ;;  %v2161_v10 = vmax.f32 %v1999_v27, 0.0 }
 0x2a8   :  { %4236 = vst [vmem:[#allocation2 + $0x18] sm:$0xff] %v3932_v14   ;;  %v2164_v3 = vmax.f32 %v2010_v61, 0.0 }
 0x2a9   :  { %4235 = vst [vmem:[#allocation2 + $0x10] sm:$0xff] %v3927_v63   ;;  %v2162_v39 = vmax.f32 %v2002_v0, 0.0  ;;  %v4809_v4 = vpop.f32.mrb[72].mxu0 }
 0x2aa   :  { %v2232_v7 = vpack.c.bf16 %v2164_v3, %v2163_v1  ;;  %v2374_v51 = vpop.f32.mrb[73].mxu0  ;;  %v2383_v2 = vadd.f32 %v4809_v4, %v5743_v22 }
 0x2ab   :  { %v2231_v35 = vpack.c.bf16 %v2162_v39, %v2161_v10  ;;  %v4777_v38 = vpop.f32.mrb[184].mxu1  ;;  %v4810_v42 = vpop.f32.mrb[74].mxu0  ;;  %v2375_v13 = vadd.f32 %v5743_v22, %v2374_v51 }
 0x2ac   :  { %v2023_v36 = vadd.f32 %v5016_v6, %v4777_v38  ;;  %v2386_v12 = vadd.f32 %v4810_v42, %v5743_v22  ;;  %v2014_v41 = vpop.f32.mrb[185].mxu1  ;;  %v2377_v8 = vpop.f32.mrb[75].mxu0 }
 0x2ad   :  { %v2015_v45 = vadd.f32 %v5016_v6, %v2014_v41  ;;  %v2378_v48 = vadd.f32 %v5743_v22, %v2377_v8  ;;  %v4778_v19 = vpop.f32.mrb[186].mxu1  ;;  %4915 = vmatprep.mubr.bf16.mxu0 %v2231_v35 }
 0x2ae   :  { %v3942_v55 = vpack.c.bf16 %v2386_v12, %v2383_v2  ;;  %v2026_v58 = vadd.f32 %v5016_v6, %v4778_v19  ;;  %v2017_v5 = vpop.f32.mrb[187].mxu1  ;;  %4916 = vmatmul.mubr.bf16.gmra.mrb[180].mxu0 %v2232_v7  ;;  %v2167_v16 = vmax.f32 %v2023_v36, 0.0 }
 0x2af   :  { %v3937_v30 = vpack.c.bf16 %v2378_v48, %v2375_v13  ;;  %v2018_v33 = vadd.f32 %v5016_v6, %v2017_v5  ;;  %v2165_v9 = vmax.f32 %v2015_v45, 0.0 }
 0x2b0   :  { %4238 = vst [vmem:[#allocation2 + $0x28] sm:$0xff] %v3942_v55   ;;  %v2168_v11 = vmax.f32 %v2026_v58, 0.0 }
 0x2b1   :  { %4237 = vst [vmem:[#allocation2 + $0x20] sm:$0xff] %v3937_v30   ;;  %v2166_v15 = vmax.f32 %v2018_v33, 0.0  ;;  %v4813_v17 = vpop.f32.mrb[76].mxu0 }
 0x2b2   :  { %v2234_v57 = vpack.c.bf16 %v2168_v11, %v2167_v16  ;;  %v2390_v18 = vpop.f32.mrb[77].mxu0  ;;  %v2399_v24 = vadd.f32 %v4813_v17, %v5743_v22 }
 0x2b3   :  { %v2233_v20 = vpack.c.bf16 %v2166_v15, %v2165_v9  ;;  %v4781_v21 = vpop.f32.mrb[188].mxu1  ;;  %v4814_v23 = vpop.f32.mrb[78].mxu0  ;;  %v2391_v32 = vadd.f32 %v5743_v22, %v2390_v18 }
 0x2b4   :  { %v2039_v25 = vadd.f32 %v5016_v6, %v4781_v21  ;;  %v2402_v26 = vadd.f32 %v4814_v23, %v5743_v22  ;;  %v2030_v29 = vpop.f32.mrb[189].mxu1  ;;  %v2393_v31 = vpop.f32.mrb[79].mxu0 }
 0x2b5   :  { %v2031_v53 = vadd.f32 %v5016_v6, %v2030_v29  ;;  %v2394_v34 = vadd.f32 %v5743_v22, %v2393_v31  ;;  %v4782_v37 = vpop.f32.mrb[190].mxu1  ;;  %4919 = vmatprep.mubr.bf16.mxu0 %v2233_v20 }
 0x2b6   :  { %v3952_v28 = vpack.c.bf16 %v2402_v26, %v2399_v24  ;;  %v2042_v40 = vadd.f32 %v5016_v6, %v4782_v37  ;;  %v2033_v43 = vpop.f32.mrb[191].mxu1  ;;  %4920 = vmatmul.mubr.bf16.gmra.mrb[184].mxu0 %v2234_v57  ;;  %v2171_v47 = vmax.f32 %v2039_v25, 0.0 }
 0x2b7   :  { %v3947_v44 = vpack.c.bf16 %v2394_v34, %v2391_v32  ;;  %v2034_v46 = vadd.f32 %v5016_v6, %v2033_v43  ;;  %v2169_v50 = vmax.f32 %v2031_v53, 0.0 }
 0x2b8   :  { %4240 = vst [vmem:[#allocation2 + $0x38] sm:$0xff] %v3952_v28   ;;  %v2172_v49 = vmax.f32 %v2042_v40, 0.0 }
 0x2b9   :  { %4239 = vst [vmem:[#allocation2 + $0x30] sm:$0xff] %v3947_v44   ;;  %v2170_v52 = vmax.f32 %v2034_v46, 0.0  ;;  %v4817_v54 = vpop.f32.mrb[80].mxu0 }
 0x2ba   :  { %v2236_v56 = vpack.c.bf16 %v2172_v49, %v2171_v47  ;;  %v2406_v27 = vpop.f32.mrb[81].mxu0  ;;  %v2415_v14 = vadd.f32 %v4817_v54, %v5743_v22 }
 0x2bb   :  { %v2235_v59 = vpack.c.bf16 %v2170_v52, %v2169_v50  ;;  %v4818_v60 = vpop.f32.mrb[82].mxu0  ;;  %v2407_v63 = vadd.f32 %v5743_v22, %v2406_v27 }
 0x2bc   :  { %v2418_v61 = vadd.f32 %v4818_v60, %v5743_v22  ;;  %v2409_v62 = vpop.f32.mrb[83].mxu0 }
 0x2bd   :  { %v2410_v0 = vadd.f32 %v5743_v22, %v2409_v62  ;;  %4923 = vmatprep.mubr.bf16.mxu0 %v2235_v59 }
 0x2be   :  { %v3962_v1 = vpack.c.bf16 %v2418_v61, %v2415_v14  ;;  %4924 = vmatmul.mubr.bf16.gmra.mrb[188].mxu0 %v2236_v56 }
 0x2bf   :  { %v3957_v3 = vpack.c.bf16 %v2410_v0, %v2407_v63 }
 0x2c0   :  { %4242 = vst [vmem:[#allocation2 + $0x48] sm:$0xff] %v3962_v1  }
 0x2c1   :  { %4241 = vst [vmem:[#allocation2 + $0x40] sm:$0xff] %v3957_v3   ;;  %v4821_v10 = vpop.f32.mrb[84].mxu0 }
 0x2c2   :  { %v2422_v39 = vpop.f32.mrb[85].mxu0  ;;  %v2431_v7 = vadd.f32 %v4821_v10, %v5743_v22 }
 0x2c3   :  { %v4822_v4 = vpop.f32.mrb[86].mxu0  ;;  %v2423_v38 = vadd.f32 %v5743_v22, %v2422_v39 }
 0x2c4   :  { %v2434_v51 = vadd.f32 %v4822_v4, %v5743_v22  ;;  %v2425_v35 = vpop.f32.mrb[87].mxu0 }
 0x2c5   :  { %v2426_v42 = vadd.f32 %v5743_v22, %v2425_v35 }
 0x2c6   :  { %v3972_v2 = vpack.c.bf16 %v2434_v51, %v2431_v7 }
 0x2c7   :  { %v3967_v6 = vpack.c.bf16 %v2426_v42, %v2423_v38 }
 0x2c8   :  { %4244 = vst [vmem:[#allocation2 + $0x58] sm:$0xff] %v3972_v2  }
 0x2c9   :  { %4243 = vst [vmem:[#allocation2 + $0x50] sm:$0xff] %v3967_v6   ;;  %v4825_v36 = vpop.f32.mrb[88].mxu0 }
 0x2ca   :  { %v2438_v12 = vpop.f32.mrb[89].mxu0  ;;  %v2447_v8 = vadd.f32 %v4825_v36, %v5743_v22 }
 0x2cb   :  { %v4826_v41 = vpop.f32.mrb[90].mxu0  ;;  %v2439_v48 = vadd.f32 %v5743_v22, %v2438_v12 }
 0x2cc   :  { %v2450_v13 = vadd.f32 %v4826_v41, %v5743_v22  ;;  %v2441_v45 = vpop.f32.mrb[91].mxu0 }
 0x2cd   :  { %v2442_v19 = vadd.f32 %v5743_v22, %v2441_v45 }
 0x2ce   :  { %v3982_v55 = vpack.c.bf16 %v2450_v13, %v2447_v8 }
 0x2cf   :  { %v3977_v58 = vpack.c.bf16 %v2442_v19, %v2439_v48 }
 0x2d0   :  { %4246 = vst [vmem:[#allocation2 + $0x68] sm:$0xff] %v3982_v55  }
 0x2d1   :  { %4245 = vst [vmem:[#allocation2 + $0x60] sm:$0xff] %v3977_v58   ;;  %v4829_v5 = vpop.f32.mrb[92].mxu0 }
 0x2d2   :  { %v2454_v30 = vpop.f32.mrb[93].mxu0  ;;  %v2463_v16 = vadd.f32 %v4829_v5, %v5743_v22 }
 0x2d3   :  { %v4830_v33 = vpop.f32.mrb[94].mxu0  ;;  %v2455_v15 = vadd.f32 %v5743_v22, %v2454_v30 }
 0x2d4   :  { %v2466_v11 = vadd.f32 %v4830_v33, %v5743_v22  ;;  %v2457_v9 = vpop.f32.mrb[95].mxu0 }
 0x2d5   :  { %v2458_v17 = vadd.f32 %v5743_v22, %v2457_v9 }
 0x2d6   :  { %v3992_v57 = vpack.c.bf16 %v2466_v11, %v2463_v16 }
 0x2d7   :  { %v3987_v18 = vpack.c.bf16 %v2458_v17, %v2455_v15 }
 0x2d8   :  { %4248 = vst [vmem:[#allocation2 + $0x78] sm:$0xff] %v3992_v57  }
 0x2d9   :  { %4247 = vst [vmem:[#allocation2 + $0x70] sm:$0xff] %v3987_v18   ;;  %v4833_v20 = vpop.f32.mrb[96].mxu0 }
 0x2da   :  { %v2470_v21 = vpop.f32.mrb[97].mxu0  ;;  %v2479_v24 = vadd.f32 %v4833_v20, %v5743_v22 }
 0x2db   :  { %v4834_v23 = vpop.f32.mrb[98].mxu0  ;;  %v2471_v29 = vadd.f32 %v5743_v22, %v2470_v21 }
 0x2dc   :  { %v2482_v25 = vadd.f32 %v4834_v23, %v5743_v22  ;;  %v2473_v26 = vpop.f32.mrb[99].mxu0 }
 0x2dd   :  { %v2474_v31 = vadd.f32 %v5743_v22, %v2473_v26 }
 0x2de   :  { %v4002_v32 = vpack.c.bf16 %v2482_v25, %v2479_v24 }
 0x2df   :  { %v3997_v53 = vpack.c.bf16 %v2474_v31, %v2471_v29 }
 0x2e0   :  { %4250 = vst [vmem:[#allocation2 + $0x88] sm:$0xff] %v4002_v32  }
 0x2e1   :  { %4249 = vst [vmem:[#allocation2 + $0x80] sm:$0xff] %v3997_v53   ;;  %v4837_v34 = vpop.f32.mrb[100].mxu0 }
 0x2e2   :  { %v2486_v37 = vpop.f32.mrb[101].mxu0  ;;  %v2495_v40 = vadd.f32 %v4837_v34, %v5743_v22 }
 0x2e3   :  { %v4838_v28 = vpop.f32.mrb[102].mxu0  ;;  %v2487_v46 = vadd.f32 %v5743_v22, %v2486_v37 }
 0x2e4   :  { %v2498_v43 = vadd.f32 %v4838_v28, %v5743_v22  ;;  %v2489_v44 = vpop.f32.mrb[103].mxu0 }
 0x2e5   :  { %v2490_v47 = vadd.f32 %v5743_v22, %v2489_v44 }
 0x2e6   :  { %v4012_v49 = vpack.c.bf16 %v2498_v43, %v2495_v40 }
 0x2e7   :  { %v4007_v50 = vpack.c.bf16 %v2490_v47, %v2487_v46 }
 0x2e8   :  { %4252 = vst [vmem:[#allocation2 + $0x98] sm:$0xff] %v4012_v49  }
 0x2e9   :  { %4251 = vst [vmem:[#allocation2 + $0x90] sm:$0xff] %v4007_v50   ;;  %v4841_v52 = vpop.f32.mrb[104].mxu0 }
 0x2ea   :  { %v2502_v54 = vpop.f32.mrb[105].mxu0  ;;  %v2511_v27 = vadd.f32 %v4841_v52, %v5743_v22 }
 0x2eb   :  { %v4842_v56 = vpop.f32.mrb[106].mxu0  ;;  %v2503_v14 = vadd.f32 %v5743_v22, %v2502_v54 }
 0x2ec   :  { %v2514_v59 = vadd.f32 %v4842_v56, %v5743_v22  ;;  %v2505_v60 = vpop.f32.mrb[107].mxu0 }
 0x2ed   :  { %v2506_v61 = vadd.f32 %v5743_v22, %v2505_v60 }
 0x2ee   :  { %v4022_v62 = vpack.c.bf16 %v2514_v59, %v2511_v27 }
 0x2ef   :  { %v4017_v63 = vpack.c.bf16 %v2506_v61, %v2503_v14 }
 0x2f0   :  { %4254 = vst [vmem:[#allocation2 + $0xa8] sm:$0xff] %v4022_v62  }
 0x2f1   :  { %4253 = vst [vmem:[#allocation2 + $0xa0] sm:$0xff] %v4017_v63   ;;  %v4845_v0 = vpop.f32.mrb[108].mxu0 }
 0x2f2   :  { %v2518_v1 = vpop.f32.mrb[109].mxu0  ;;  %v2527_v10 = vadd.f32 %v4845_v0, %v5743_v22 }
 0x2f3   :  { %v4846_v3 = vpop.f32.mrb[110].mxu0  ;;  %v2519_v7 = vadd.f32 %v5743_v22, %v2518_v1 }
 0x2f4   :  { %v2530_v39 = vadd.f32 %v4846_v3, %v5743_v22  ;;  %v2521_v4 = vpop.f32.mrb[111].mxu0 }
 0x2f5   :  { %v2522_v51 = vadd.f32 %v5743_v22, %v2521_v4 }
 0x2f6   :  { %v4032_v35 = vpack.c.bf16 %v2530_v39, %v2527_v10 }
 0x2f7   :  { %v4027_v38 = vpack.c.bf16 %v2522_v51, %v2519_v7 }
 0x2f8   :  { %4256 = vst [vmem:[#allocation2 + $0xb8] sm:$0xff] %v4032_v35  }
 0x2f9   :  { %4255 = vst [vmem:[#allocation2 + $0xb0] sm:$0xff] %v4027_v38   ;;  %v4849_v42 = vpop.f32.mrb[112].mxu0 }
 0x2fa   :  { %v2534_v2 = vpop.f32.mrb[113].mxu0  ;;  %v2543_v36 = vadd.f32 %v4849_v42, %v5743_v22 }
 0x2fb   :  { %v4850_v6 = vpop.f32.mrb[114].mxu0  ;;  %v2535_v8 = vadd.f32 %v5743_v22, %v2534_v2 }
 0x2fc   :  { %v2546_v12 = vadd.f32 %v4850_v6, %v5743_v22  ;;  %v2537_v41 = vpop.f32.mrb[115].mxu0 }
 0x2fd   :  { %v2538_v13 = vadd.f32 %v5743_v22, %v2537_v41 }
 0x2fe   :  { %v4042_v45 = vpack.c.bf16 %v2546_v12, %v2543_v36 }
 0x2ff   :  { %v4037_v48 = vpack.c.bf16 %v2538_v13, %v2535_v8 }
 0x300   :  { %4258 = vst [vmem:[#allocation2 + $0xc8] sm:$0xff] %v4042_v45  }
 0x301   :  { %4257 = vst [vmem:[#allocation2 + $0xc0] sm:$0xff] %v4037_v48   ;;  %v4853_v19 = vpop.f32.mrb[116].mxu0 }
 0x302   :  { %v2550_v55 = vpop.f32.mrb[117].mxu0  ;;  %v2559_v5 = vadd.f32 %v4853_v19, %v5743_v22 }
 0x303   :  { %v4854_v58 = vpop.f32.mrb[118].mxu0  ;;  %v2551_v16 = vadd.f32 %v5743_v22, %v2550_v55 }
 0x304   :  { %v2562_v30 = vadd.f32 %v4854_v58, %v5743_v22  ;;  %v2553_v33 = vpop.f32.mrb[119].mxu0 }
 0x305   :  { %v2554_v11 = vadd.f32 %v5743_v22, %v2553_v33 }
 0x306   :  { %v4052_v9 = vpack.c.bf16 %v2562_v30, %v2559_v5 }
 0x307   :  { %v4047_v15 = vpack.c.bf16 %v2554_v11, %v2551_v16 }
 0x308   :  { %4260 = vst [vmem:[#allocation2 + $0xd8] sm:$0xff] %v4052_v9  }
 0x309   :  { %4259 = vst [vmem:[#allocation2 + $0xd0] sm:$0xff] %v4047_v15   ;;  %v4857_v17 = vpop.f32.mrb[120].mxu0 }
 0x30a   :  { %v2566_v57 = vpop.f32.mrb[121].mxu0  ;;  %v2575_v20 = vadd.f32 %v4857_v17, %v5743_v22 }
 0x30b   :  { %v4858_v18 = vpop.f32.mrb[122].mxu0  ;;  %v2567_v24 = vadd.f32 %v5743_v22, %v2566_v57 }
 0x30c   :  { %v2578_v21 = vadd.f32 %v4858_v18, %v5743_v22  ;;  %v2569_v23 = vpop.f32.mrb[123].mxu0 }
 0x30d   :  { %v2570_v25 = vadd.f32 %v5743_v22, %v2569_v23 }
 0x30e   :  { %v4062_v26 = vpack.c.bf16 %v2578_v21, %v2575_v20 }
 0x30f   :  { %v4057_v29 = vpack.c.bf16 %v2570_v25, %v2567_v24 }
 0x310   :  { %4262 = vst [vmem:[#allocation2 + $0xe8] sm:$0xff] %v4062_v26  }
 0x311   :  { %4261 = vst [vmem:[#allocation2 + $0xe0] sm:$0xff] %v4057_v29   ;;  %v4861_v31 = vpop.f32.mrb[124].mxu0 }
 0x312   :  { %v2582_v32 = vpop.f32.mrb[125].mxu0  ;;  %v2591_v34 = vadd.f32 %v4861_v31, %v5743_v22 }
 0x313   :  { %v4862_v53 = vpop.f32.mrb[126].mxu0  ;;  %v2583_v40 = vadd.f32 %v5743_v22, %v2582_v32 }
 0x314   :  { %v2594_v37 = vadd.f32 %v4862_v53, %v5743_v22  ;;  %v2585_v28 = vpop.f32.mrb[127].mxu0 }
 0x315   :  { %v2586_v43 = vadd.f32 %v5743_v22, %v2585_v28 }
 0x316   :  { %v4072_v44 = vpack.c.bf16 %v2594_v37, %v2591_v34 }
 0x317   :  { %v4067_v46 = vpack.c.bf16 %v2586_v43, %v2583_v40 }
 0x318   :  { %4264 = vst [vmem:[#allocation2 + $0xf8] sm:$0xff] %v4072_v44  }
 0x319   :  { %4263 = vst [vmem:[#allocation2 + $0xf0] sm:$0xff] %v4067_v46   ;;  %v4865_v47 = vpop.f32.mrb[128].mxu0 }
 0x31a   :  { %v2598_v49 = vpop.f32.mrb[129].mxu0  ;;  %v2607_v52 = vadd.f32 %v4865_v47, %v5743_v22 }
 0x31b   :  { %v4866_v50 = vpop.f32.mrb[130].mxu0  ;;  %v2599_v27 = vadd.f32 %v5743_v22, %v2598_v49 }
 0x31c   :  { %v2610_v54 = vadd.f32 %v4866_v50, %v5743_v22  ;;  %v2601_v56 = vpop.f32.mrb[131].mxu0 }
 0x31d   :  { %v2602_v59 = vadd.f32 %v5743_v22, %v2601_v56 }
 0x31e   :  { %v4082_v60 = vpack.c.bf16 %v2610_v54, %v2607_v52 }
 0x31f   :  { %v4077_v14 = vpack.c.bf16 %v2602_v59, %v2599_v27 }
 0x320   :  { %4266 = vst [vmem:[#allocation2 + $0x108] sm:$0xff] %v4082_v60  }
 0x321   :  { %4265 = vst [vmem:[#allocation2 + $0x100] sm:$0xff] %v4077_v14   ;;  %v4869_v61 = vpop.f32.mrb[132].mxu0 }
 0x322   :  { %v2614_v62 = vpop.f32.mrb[133].mxu0  ;;  %v2623_v0 = vadd.f32 %v4869_v61, %v5743_v22 }
 0x323   :  { %v4870_v63 = vpop.f32.mrb[134].mxu0  ;;  %v2615_v10 = vadd.f32 %v5743_v22, %v2614_v62 }
 0x324   :  { %v2626_v1 = vadd.f32 %v4870_v63, %v5743_v22  ;;  %v2617_v3 = vpop.f32.mrb[135].mxu0 }
 0x325   :  { %v2618_v39 = vadd.f32 %v5743_v22, %v2617_v3 }
 0x326   :  { %v4092_v4 = vpack.c.bf16 %v2626_v1, %v2623_v0 }
 0x327   :  { %v4087_v7 = vpack.c.bf16 %v2618_v39, %v2615_v10 }
 0x328   :  { %4268 = vst [vmem:[#allocation2 + $0x118] sm:$0xff] %v4092_v4  }
 0x329   :  { %4267 = vst [vmem:[#allocation2 + $0x110] sm:$0xff] %v4087_v7   ;;  %v4873_v51 = vpop.f32.mrb[136].mxu0 }
 0x32a   :  { %v2630_v35 = vpop.f32.mrb[137].mxu0  ;;  %v2639_v42 = vadd.f32 %v4873_v51, %v5743_v22 }
 0x32b   :  { %v4874_v38 = vpop.f32.mrb[138].mxu0  ;;  %v2631_v36 = vadd.f32 %v5743_v22, %v2630_v35 }
 0x32c   :  { %v2642_v2 = vadd.f32 %v4874_v38, %v5743_v22  ;;  %v2633_v6 = vpop.f32.mrb[139].mxu0 }
 0x32d   :  { %v2634_v12 = vadd.f32 %v5743_v22, %v2633_v6 }
 0x32e   :  { %v4102_v41 = vpack.c.bf16 %v2642_v2, %v2639_v42 }
 0x32f   :  { %v4097_v8 = vpack.c.bf16 %v2634_v12, %v2631_v36 }
 0x330   :  { %4270 = vst [vmem:[#allocation2 + $0x128] sm:$0xff] %v4102_v41  }
 0x331   :  { %4269 = vst [vmem:[#allocation2 + $0x120] sm:$0xff] %v4097_v8   ;;  %v4877_v13 = vpop.f32.mrb[140].mxu0 }
 0x332   :  { %v2646_v45 = vpop.f32.mrb[141].mxu0  ;;  %v2655_v19 = vadd.f32 %v4877_v13, %v5743_v22 }
 0x333   :  { %v4878_v48 = vpop.f32.mrb[142].mxu0  ;;  %v2647_v5 = vadd.f32 %v5743_v22, %v2646_v45 }
 0x334   :  { %v2658_v55 = vadd.f32 %v4878_v48, %v5743_v22  ;;  %v2649_v58 = vpop.f32.mrb[143].mxu0 }
 0x335   :  { %v2650_v30 = vadd.f32 %v5743_v22, %v2649_v58 }
 0x336   :  { %v4112_v33 = vpack.c.bf16 %v2658_v55, %v2655_v19 }
 0x337   :  { %v4107_v16 = vpack.c.bf16 %v2650_v30, %v2647_v5 }
 0x338   :  { %4272 = vst [vmem:[#allocation2 + $0x138] sm:$0xff] %v4112_v33  }
 0x339   :  { %4271 = vst [vmem:[#allocation2 + $0x130] sm:$0xff] %v4107_v16   ;;  %v4881_v11 = vpop.f32.mrb[144].mxu0 }
 0x33a   :  { %v2662_v9 = vpop.f32.mrb[145].mxu0  ;;  %v2671_v17 = vadd.f32 %v4881_v11, %v5743_v22 }
 0x33b   :  { %v4882_v15 = vpop.f32.mrb[146].mxu0  ;;  %v2663_v20 = vadd.f32 %v5743_v22, %v2662_v9 }
 0x33c   :  { %v2674_v57 = vadd.f32 %v4882_v15, %v5743_v22  ;;  %v2665_v18 = vpop.f32.mrb[147].mxu0 }
 0x33d   :  { %v2666_v21 = vadd.f32 %v5743_v22, %v2665_v18 }
 0x33e   :  { %v4122_v23 = vpack.c.bf16 %v2674_v57, %v2671_v17 }
 0x33f   :  { %v4117_v24 = vpack.c.bf16 %v2666_v21, %v2663_v20 }
 0x340   :  { %4274 = vst [vmem:[#allocation2 + $0x148] sm:$0xff] %v4122_v23  }
 0x341   :  { %4273 = vst [vmem:[#allocation2 + $0x140] sm:$0xff] %v4117_v24   ;;  %v4885_v25 = vpop.f32.mrb[148].mxu0 }
 0x342   :  { %v2678_v26 = vpop.f32.mrb[149].mxu0  ;;  %v2687_v31 = vadd.f32 %v4885_v25, %v5743_v22 }
 0x343   :  { %v4886_v29 = vpop.f32.mrb[150].mxu0  ;;  %v2679_v34 = vadd.f32 %v5743_v22, %v2678_v26 }
 0x344   :  { %v2690_v32 = vadd.f32 %v4886_v29, %v5743_v22  ;;  %v2681_v53 = vpop.f32.mrb[151].mxu0 }
 0x345   :  { %v2682_v37 = vadd.f32 %v5743_v22, %v2681_v53 }
 0x346   :  { %v4132_v28 = vpack.c.bf16 %v2690_v32, %v2687_v31 }
 0x347   :  { %v4127_v40 = vpack.c.bf16 %v2682_v37, %v2679_v34 }
 0x348   :  { %4276 = vst [vmem:[#allocation2 + $0x158] sm:$0xff] %v4132_v28  }
 0x349   :  { %4275 = vst [vmem:[#allocation2 + $0x150] sm:$0xff] %v4127_v40   ;;  %v4889_v43 = vpop.f32.mrb[152].mxu0 }
 0x34a   :  { %v2694_v44 = vpop.f32.mrb[153].mxu0  ;;  %v2703_v47 = vadd.f32 %v4889_v43, %v5743_v22 }
 0x34b   :  { %v4890_v46 = vpop.f32.mrb[154].mxu0  ;;  %v2695_v52 = vadd.f32 %v5743_v22, %v2694_v44 }
 0x34c   :  { %v2706_v49 = vadd.f32 %v4890_v46, %v5743_v22  ;;  %v2697_v50 = vpop.f32.mrb[155].mxu0 }
 0x34d   :  { %v2698_v54 = vadd.f32 %v5743_v22, %v2697_v50 }
 0x34e   :  { %v4142_v56 = vpack.c.bf16 %v2706_v49, %v2703_v47 }
 0x34f   :  { %v4137_v27 = vpack.c.bf16 %v2698_v54, %v2695_v52 }
 0x350   :  { %4278 = vst [vmem:[#allocation2 + $0x168] sm:$0xff] %v4142_v56  }
 0x351   :  { %4277 = vst [vmem:[#allocation2 + $0x160] sm:$0xff] %v4137_v27   ;;  %v4893_v59 = vpop.f32.mrb[156].mxu0 }
 0x352   :  { %v2710_v60 = vpop.f32.mrb[157].mxu0  ;;  %v2719_v61 = vadd.f32 %v4893_v59, %v5743_v22 }
 0x353   :  { %v4894_v14 = vpop.f32.mrb[158].mxu0  ;;  %v2711_v0 = vadd.f32 %v5743_v22, %v2710_v60 }
 0x354   :  { %v2722_v62 = vadd.f32 %v4894_v14, %v5743_v22  ;;  %v2713_v63 = vpop.f32.mrb[159].mxu0 }
 0x355   :  { %v2714_v1 = vadd.f32 %v5743_v22, %v2713_v63 }
 0x356   :  { %v4152_v3 = vpack.c.bf16 %v2722_v62, %v2719_v61 }
 0x357   :  { %v4147_v10 = vpack.c.bf16 %v2714_v1, %v2711_v0 }
 0x358   :  { %4280 = vst [vmem:[#allocation2 + $0x178] sm:$0xff] %v4152_v3  }
 0x359   :  { %4279 = vst [vmem:[#allocation2 + $0x170] sm:$0xff] %v4147_v10   ;;  %v4897_v39 = vpop.f32.mrb[160].mxu0 }
 0x35a   :  { %v2726_v4 = vpop.f32.mrb[161].mxu0  ;;  %v2735_v51 = vadd.f32 %v4897_v39, %v5743_v22 }
 0x35b   :  { %v4898_v7 = vpop.f32.mrb[162].mxu0  ;;  %v2727_v42 = vadd.f32 %v5743_v22, %v2726_v4 }
 0x35c   :  { %v2738_v35 = vadd.f32 %v4898_v7, %v5743_v22  ;;  %v2729_v38 = vpop.f32.mrb[163].mxu0 }
 0x35d   :  { %v2730_v2 = vadd.f32 %v5743_v22, %v2729_v38 }
 0x35e   :  { %v4162_v6 = vpack.c.bf16 %v2738_v35, %v2735_v51 }
 0x35f   :  { %v4157_v36 = vpack.c.bf16 %v2730_v2, %v2727_v42 }
 0x360   :  { %4282 = vst [vmem:[#allocation2 + $0x188] sm:$0xff] %v4162_v6  }
 0x361   :  { %4281 = vst [vmem:[#allocation2 + $0x180] sm:$0xff] %v4157_v36   ;;  %v4901_v12 = vpop.f32.mrb[164].mxu0 }
 0x362   :  { %v2742_v41 = vpop.f32.mrb[165].mxu0  ;;  %v2751_v13 = vadd.f32 %v4901_v12, %v5743_v22 }
 0x363   :  { %v4902_v8 = vpop.f32.mrb[166].mxu0  ;;  %v2743_v19 = vadd.f32 %v5743_v22, %v2742_v41 }
 0x364   :  { %v2754_v45 = vadd.f32 %v4902_v8, %v5743_v22  ;;  %v2745_v48 = vpop.f32.mrb[167].mxu0 }
 0x365   :  { %v2746_v55 = vadd.f32 %v5743_v22, %v2745_v48 }
 0x366   :  { %v4172_v58 = vpack.c.bf16 %v2754_v45, %v2751_v13 }
 0x367   :  { %v4167_v5 = vpack.c.bf16 %v2746_v55, %v2743_v19 }
 0x368   :  { %4284 = vst [vmem:[#allocation2 + $0x198] sm:$0xff] %v4172_v58  }
 0x369   :  { %4283 = vst [vmem:[#allocation2 + $0x190] sm:$0xff] %v4167_v5   ;;  %v4905_v30 = vpop.f32.mrb[168].mxu0 }
 0x36a   :  { %v2758_v33 = vpop.f32.mrb[169].mxu0  ;;  %v2767_v11 = vadd.f32 %v4905_v30, %v5743_v22 }
 0x36b   :  { %v4906_v16 = vpop.f32.mrb[170].mxu0  ;;  %v2759_v17 = vadd.f32 %v5743_v22, %v2758_v33 }
 0x36c   :  { %v2770_v9 = vadd.f32 %v4906_v16, %v5743_v22  ;;  %v2761_v15 = vpop.f32.mrb[171].mxu0 }
 0x36d   :  { %v2762_v57 = vadd.f32 %v5743_v22, %v2761_v15 }
 0x36e   :  { %v4182_v18 = vpack.c.bf16 %v2770_v9, %v2767_v11 }
 0x36f   :  { %v4177_v20 = vpack.c.bf16 %v2762_v57, %v2759_v17 }
 0x370   :  { %4286 = vst [vmem:[#allocation2 + $0x1a8] sm:$0xff] %v4182_v18  }
 0x371   :  { %4285 = vst [vmem:[#allocation2 + $0x1a0] sm:$0xff] %v4177_v20   ;;  %v4909_v21 = vpop.f32.mrb[172].mxu0 }
 0x372   :  { %v2774_v23 = vpop.f32.mrb[173].mxu0  ;;  %v2783_v25 = vadd.f32 %v4909_v21, %v5743_v22 }
 0x373   :  { %v4910_v24 = vpop.f32.mrb[174].mxu0  ;;  %v2775_v31 = vadd.f32 %v5743_v22, %v2774_v23 }
 0x374   :  { %v2786_v26 = vadd.f32 %v4910_v24, %v5743_v22  ;;  %v2777_v29 = vpop.f32.mrb[175].mxu0 }
 0x375   :  { %v2778_v32 = vadd.f32 %v5743_v22, %v2777_v29 }
 0x376   :  { %v4192_v53 = vpack.c.bf16 %v2786_v26, %v2783_v25 }
 0x377   :  { %v4187_v34 = vpack.c.bf16 %v2778_v32, %v2775_v31 }
 0x378   :  { %4288 = vst [vmem:[#allocation2 + $0x1b8] sm:$0xff] %v4192_v53  }
 0x379   :  { %4287 = vst [vmem:[#allocation2 + $0x1b0] sm:$0xff] %v4187_v34   ;;  %v4913_v37 = vpop.f32.mrb[176].mxu0 }
 0x37a   :  { %v2790_v28 = vpop.f32.mrb[177].mxu0  ;;  %v2799_v43 = vadd.f32 %v4913_v37, %v5743_v22 }
 0x37b   :  { %v4914_v40 = vpop.f32.mrb[178].mxu0  ;;  %v2791_v47 = vadd.f32 %v5743_v22, %v2790_v28 }
 0x37c   :  { %v2802_v44 = vadd.f32 %v4914_v40, %v5743_v22  ;;  %v2793_v46 = vpop.f32.mrb[179].mxu0 }
 0x37d   :  { %v2794_v49 = vadd.f32 %v5743_v22, %v2793_v46 }
 0x37e   :  { %v4202_v50 = vpack.c.bf16 %v2802_v44, %v2799_v43 }
 0x37f   :  { %v4197_v52 = vpack.c.bf16 %v2794_v49, %v2791_v47 }
 0x380   :  { %4290 = vst [vmem:[#allocation2 + $0x1c8] sm:$0xff] %v4202_v50  }
 0x381   :  { %4289 = vst [vmem:[#allocation2 + $0x1c0] sm:$0xff] %v4197_v52   ;;  %v4917_v54 = vpop.f32.mrb[180].mxu0 }
 0x382   :  { %v2806_v56 = vpop.f32.mrb[181].mxu0  ;;  %v2815_v59 = vadd.f32 %v4917_v54, %v5743_v22 }
 0x383   :  { %v4918_v27 = vpop.f32.mrb[182].mxu0  ;;  %v2807_v61 = vadd.f32 %v5743_v22, %v2806_v56 }
 0x384   :  { %v2818_v60 = vadd.f32 %v4918_v27, %v5743_v22  ;;  %v2809_v14 = vpop.f32.mrb[183].mxu0 }
 0x385   :  { %v2810_v62 = vadd.f32 %v5743_v22, %v2809_v14 }
 0x386   :  { %v4212_v63 = vpack.c.bf16 %v2818_v60, %v2815_v59 }
 0x387   :  { %v4207_v0 = vpack.c.bf16 %v2810_v62, %v2807_v61 }
 0x388   :  { %4292 = vst [vmem:[#allocation2 + $0x1d8] sm:$0xff] %v4212_v63  }
 0x389   :  { %4291 = vst [vmem:[#allocation2 + $0x1d0] sm:$0xff] %v4207_v0   ;;  %v4921_v1 = vpop.f32.mrb[184].mxu0 }
 0x38a   :  { %v2822_v3 = vpop.f32.mrb[185].mxu0  ;;  %v2831_v39 = vadd.f32 %v4921_v1, %v5743_v22 }
 0x38b   :  { %v4922_v10 = vpop.f32.mrb[186].mxu0  ;;  %v2823_v51 = vadd.f32 %v5743_v22, %v2822_v3 }
 0x38c   :  { %v2834_v4 = vadd.f32 %v4922_v10, %v5743_v22  ;;  %v2825_v7 = vpop.f32.mrb[187].mxu0 }
 0x38d   :  { %v2826_v35 = vadd.f32 %v5743_v22, %v2825_v7 }
 0x38e   :  { %v4222_v38 = vpack.c.bf16 %v2834_v4, %v2831_v39 }
 0x38f   :  { %v4217_v42 = vpack.c.bf16 %v2826_v35, %v2823_v51 }
 0x390   :  { %4294 = vst [vmem:[#allocation2 + $0x1e8] sm:$0xff] %v4222_v38  }
 0x391   :  { %4293 = vst [vmem:[#allocation2 + $0x1e0] sm:$0xff] %v4217_v42   ;;  %v4925_v2 = vpop.f32.mrb[188].mxu0 }
 0x392   :  { %v2838_v6 = vpop.f32.mrb[189].mxu0  ;;  %v2847_v12 = vadd.f32 %v4925_v2, %v5743_v22 }
 0x393   :  { %v4926_v36 = vpop.f32.mrb[190].mxu0  ;;  %v2839_v13 = vadd.f32 %v5743_v22, %v2838_v6 }
 0x394   :  { %v2850_v41 = vadd.f32 %v4926_v36, %v5743_v22  ;;  %v2841_v8 = vpop.f32.mrb[191].mxu0 }
 0x395   :  { %v2842_v45 = vadd.f32 %v5743_v22, %v2841_v8 }
 0x396   :  { %v4232_v48 = vpack.c.bf16 %v2850_v41, %v2847_v12 }
 0x397   :  { %v4227_v19 = vpack.c.bf16 %v2842_v45, %v2839_v13 }
 0x398   :  { %4296 = vst [vmem:[#allocation2 + $0x1f8] sm:$0xff] %v4232_v48  }
 0x399   :  { %4295 = vst [vmem:[#allocation2 + $0x1f0] sm:$0xff] %v4227_v19  }
 0x39a   :  { %5028 = shalt.err (!%p5025_p4)
}
 0x39b   :  { %s5029_s24 = scalar_lea.hbm %s5903_s7, 8192 }
 0x39c   :  { %p5030_p5 = scmp.ne.s32.totalorder %s5903_s7, %s5029_s24  ;;  %p5033_p6 = scmp.lt.u32.totalorder %s5029_s24, %s5903_s7 }
 0x39e   :  { %p5035_p7 = pnand %p5033_p6, %p5030_p5 }
 0x3a0   :  { %5038 = shalt.err (!%p5035_p7)
}
 0x3a1   :  { %s5042_s29 = smov 64   ;;  %s5043_s30 = smov 4  }
 0x3a2   :  { %3504 = dma.vmem_to_hbm [thread:$0]  %s3499_s20, 8192, %s5903_s7, [#allocation3], %s5042_s29, %s5042_s29, %s5043_s30  }
 0x3a3   :  { %5039 = dma.done.wait [#allocation3], 8192  }
 0x3a4   :  { %5040 = vsyncadd [#allocation3], 4294959104 }
 0x3a5   :  { %3508 = vsyncpa [#allocation3], 1 }

</bundles_post_ra>
